<compile_context>
chip_gen: v7x
topology: tpu7x:2x2x1
jax: 0.10.0
libtpu: 0.0.40
codegen_flags: <defaults>
</compile_context>

<pallas_src>
import functools
import math

import jax
import jax.numpy as jnp
import numpy as np
from jax.experimental import pallas as pl
from jax.experimental.pallas import tpu as pltpu


def _ctrgc_kernel(x_ref, s_ref, w1_ref, b1_ref, w2_ref, b2_ref,
                  w3_ref, b3_ref, w4_ref, c4_ref, out_ref, *, T, V):
    TV = T * V
    x = x_ref[0, 0]                 # (C, T*V) lane-dense
    S = s_ref[...]                  # (T*V, V) constant selector, entries 1/T

    # mean over time (1x1 conv commutes with the mean): one MXU matmul.
    xm = jnp.dot(x, S, preferred_element_type=jnp.float32)                        # (C, V)

    # conv1 / conv2 on time-averaged features.
    y1 = jnp.dot(w1_ref[0], xm, preferred_element_type=jnp.float32) + b1_ref[0]   # (R, V)
    y2 = jnp.dot(w2_ref[0], xm, preferred_element_type=jnp.float32) + b2_ref[0]   # (R, V)

    # conv3 on the full (T*V)-lane sequence: single matmul.
    y3 = jnp.dot(w3_ref[0], x, preferred_element_type=jnp.float32) + b3_ref[0]    # (O, T*V)

    # d[r, u*V + v] = tanh(y1[r, u] - y2[r, v])  (outer difference, lane-dense)
    R = y1.shape[0]
    d = jnp.tanh(y1[:, :, None] - y2[:, None, :]).reshape(R, V * V)               # (R, V*V)

    # a1 = conv4(d) * alpha + A ; alpha folded into w4, (alpha*b4 + A) folded into c4.
    a1 = jnp.dot(w4_ref[0], d, preferred_element_type=jnp.float32) + c4_ref[0]    # (O, V*V)

    # out[o, t, u] = sum_v a1[o, u, v] * y3[o, t, v]   (torch einsum 'ncuv,nctv->nctu')
    O = y3.shape[0]
    out = jnp.einsum('otv,ouv->otu',
                     y3.reshape(O, T, V), a1.reshape(O, V, V),
                     preferred_element_type=jnp.float32)
    out_ref[0, 0] = out.reshape(O, TV).astype(out_ref.dtype)                      # lane-dense store


def ctrgc_forward(params, jo, bo, jm, bm,
                  jo_A=None, jo_alpha=1.0, bo_A=None, bo_alpha=1.0,
                  jm_A=None, jm_alpha=1.0, bm_A=None, bm_alpha=1.0):
    """All 4 CTRGC branches fused into one Pallas call. Returns (jo1, bo1, jm1, bm1)."""
    # TODO(synk): the torch forward's debug print(...) statements are omitted.
    branches = ("jo", "bo", "jm", "bm")
    xs = (jo, bo, jm, bm)
    As = (jo_A, bo_A, jm_A, bm_A)
    alphas = (jo_alpha, bo_alpha, jm_alpha, bm_alpha)

    N, C, T, V = jo.shape
    R = params["jo"][0].shape[0]
    O = params["jo"][4].shape[0]
    TV, VV = T * V, V * V

    # Inputs stacked per-branch and flattened lane-dense: (4, N, C, T*V).
    x_all = jnp.stack(xs, axis=0).reshape(4, N, C, TV)

    # Time-mean selection matrix: S[t*V + v, v] = 1/T.
    S = jnp.kron(jnp.ones((T, 1), jnp.float32), jnp.eye(V, dtype=jnp.float32)) / T

    def stk(i):
        return jnp.stack([params[k][i] for k in branches], axis=0)

    w1s = stk(0)                               # (4, R, C)
    b1s = stk(1).reshape(4, R, 1)
    w2s = stk(2)                               # (4, R, C)
    b2s = stk(3).reshape(4, R, 1)
    w3s = stk(4)                               # (4, O, C)
    b3s = stk(5).reshape(4, O, 1)
    # Fold alpha into conv4 weight, and fold (alpha * b4 + A) into one additive term.
    w4s = jnp.stack([alphas[i] * params[k][6] for i, k in enumerate(branches)], 0)      # (4, O, R)
    c4s = jnp.stack([
        alphas[i] * params[k][7].reshape(O, 1)
        + (As[i].reshape(1, VV) if As[i] is not None else jnp.zeros((1, VV), jnp.float32))
        for i, k in enumerate(branches)], axis=0)                                        # (4, O, V*V)

    kernel = functools.partial(_ctrgc_kernel, T=T, V=V)
    grid_spec = pltpu.PrefetchScalarGridSpec(
        num_scalar_prefetch=0,
        grid=(4, N),                                                  # (branch, batch)
        in_specs=[
            pl.BlockSpec((1, 1, C, TV), lambda b, n: (b, n, 0, 0)),   # x (lane-dense)
            pl.BlockSpec((TV, V), lambda b, n: (0, 0)),               # S (fetched once)
            pl.BlockSpec((1, R, C), lambda b, n: (b, 0, 0)),          # w1
            pl.BlockSpec((1, R, 1), lambda b, n: (b, 0, 0)),          # b1
            pl.BlockSpec((1, R, C), lambda b, n: (b, 0, 0)),          # w2
            pl.BlockSpec((1, R, 1), lambda b, n: (b, 0, 0)),          # b2
            pl.BlockSpec((1, O, C), lambda b, n: (b, 0, 0)),          # w3
            pl.BlockSpec((1, O, 1), lambda b, n: (b, 0, 0)),          # b3
            pl.BlockSpec((1, O, R), lambda b, n: (b, 0, 0)),          # alpha * w4
            pl.BlockSpec((1, O, VV), lambda b, n: (b, 0, 0)),         # alpha*b4 + A
        ],
        out_specs=pl.BlockSpec((1, 1, O, TV), lambda b, n: (b, n, 0, 0)),
    )
    out = pl.pallas_call(
        kernel,
        out_shape=jax.ShapeDtypeStruct((4, N, O, TV), jo.dtype),
        grid_spec=grid_spec,
        compiler_params=pltpu.CompilerParams(
            dimension_semantics=("parallel", "parallel")),
    )(x_all, S, w1s, b1s, w2s, b2s, w3s, b3s, w4s, c4s)

    out = out.reshape(4, N, O, T, V)
    return out[0], out[1], out[2], out[3]


def init_ctrgc_params(key, in_channels, out_channels, rel_reduction=8):
    """Deterministic synthetic init matching the module's shapes/init scheme."""
    if in_channels in (3, 9):
        rel = 8
    else:
        rel = in_channels // rel_reduction

    def conv(k, o, i):
        # kaiming_normal_(mode='fan_out'): std = sqrt(2 / fan_out), fan_out = o*1*1
        std = math.sqrt(2.0 / o)
        w = jax.random.normal(k, (o, i), jnp.float32) * std   # 1x1 conv -> (O, C)
        b = jnp.zeros((o,), jnp.float32)                       # conv_init: bias = 0
        return w, b

    keys = iter(jax.random.split(key, 16))
    params = {}
    for branch in ("jo", "bo", "jm", "bm"):
        w1, b1 = conv(next(keys), rel, in_channels)
        w2, b2 = conv(next(keys), rel, in_channels)
        w3, b3 = conv(next(keys), out_channels, in_channels)
        w4, b4 = conv(next(keys), out_channels, rel)
        params[branch] = (w1, b1, w2, b2, w3, b3, w4, b4)
    return params


# ---------------- pure-JAX reference for correctness checking ----------------
def _branch_ref(x, params, A=None, alpha=1.0):
    w1, b1, w2, b2, w3, b3, w4, b4 = params

    def conv1x1(x, w, b):
        return jnp.einsum('oc,nctv->notv', w, x) + b[None, :, None, None]

    x1 = conv1x1(x, w1, b1).mean(axis=2)            # (N, R, V)
    x2 = conv1x1(x, w2, b2).mean(axis=2)            # (N, R, V)
    x3 = conv1x1(x, w3, b3)                         # (N, O, T, V)
    d = jnp.tanh(x1[..., :, None] - x2[..., None, :])            # (N, R, V, V)
    a1 = jnp.einsum('or,nruv->nouv', w4, d) + b4[None, :, None, None]
    a1 = a1 * alpha + (A[None, None] if A is not None else 0.0)
    return jnp.einsum('ncuv,nctv->nctu', a1, x3)


if __name__ == "__main__":
    N, C_IN, C_OUT, T, V = 2, 16, 16, 8, 16

    key = jax.random.PRNGKey(0)
    kp, kjo, kbo, kjm, kbm, ka = jax.random.split(key, 6)
    params = init_ctrgc_params(kp, C_IN, C_OUT)

    jo = jax.random.normal(kjo, (N, C_IN, T, V), jnp.float32)
    bo = jax.random.normal(kbo, (N, C_IN, T, V), jnp.float32)
    jm = jax.random.normal(kjm, (N, C_IN, T, V), jnp.float32)
    bm = jax.random.normal(kbm, (N, C_IN, T, V), jnp.float32)
    jo_A = 0.1 * jax.random.normal(ka, (V, V), jnp.float32)   # exercise the A path

    outs = ctrgc_forward(params, jo, bo, jm, bm,
                         jo_A=jo_A, jo_alpha=1.0, bo_alpha=0.5)
    outs = jax.block_until_ready(outs)

    refs = (_branch_ref(jo, params["jo"], jo_A, 1.0),
            _branch_ref(bo, params["bo"], None, 0.5),
            _branch_ref(jm, params["jm"], None, 1.0),
            _branch_ref(bm, params["bm"], None, 1.0))

    for o, r in zip(outs, refs):
        assert o.shape == (N, C_OUT, T, V), o.shape
        np.testing.assert_allclose(np.asarray(o), np.asarray(r),
                                   rtol=1e-4, atol=1e-4)

    print("KERNEL_OK")
</pallas_src>

<mosaic_0001>
module attributes {stable_mosaic.version = 11 : i64} {
  func.func @_ctrgc_kernel(%arg0: i32, %arg1: i32, %arg2: memref<1x1x16x128xf32, #tpu.memory_space<vmem>>, %arg3: memref<128x16xf32, #tpu.memory_space<vmem>>, %arg4: memref<1x2x16xf32, #tpu.memory_space<vmem>>, %arg5: memref<1x2x1xf32, #tpu.memory_space<vmem>>, %arg6: memref<1x2x16xf32, #tpu.memory_space<vmem>>, %arg7: memref<1x2x1xf32, #tpu.memory_space<vmem>>, %arg8: memref<1x16x16xf32, #tpu.memory_space<vmem>>, %arg9: memref<1x16x1xf32, #tpu.memory_space<vmem>>, %arg10: memref<1x16x2xf32, #tpu.memory_space<vmem>>, %arg11: memref<1x16x256xf32, #tpu.memory_space<vmem>>, %arg12: memref<1x1x16x128xf32, #tpu.memory_space<vmem>>) attributes {dimension_semantics = [#tpu.dimension_semantics<parallel>, #tpu.dimension_semantics<parallel>], iteration_bounds = array<i64: 4, 2>, scalar_prefetch = 0 : i64, scratch_operands = 0 : i64, tpu.core_type = #tpu.core_type<tc>, window_params = [{transform_indices = @transform_0, window_bounds = array<i64: 1, 1, 16, 128>}, {pipeline_mode = #tpu.pipeline_mode<synchronous>, transform_indices = @transform_1, window_bounds = array<i64: 128, 16>}, {transform_indices = @transform_2, window_bounds = array<i64: 1, 2, 16>}, {transform_indices = @transform_3, window_bounds = array<i64: 1, 2, 1>}, {transform_indices = @transform_4, window_bounds = array<i64: 1, 2, 16>}, {transform_indices = @transform_5, window_bounds = array<i64: 1, 2, 1>}, {transform_indices = @transform_6, window_bounds = array<i64: 1, 16, 16>}, {transform_indices = @transform_7, window_bounds = array<i64: 1, 16, 1>}, {transform_indices = @transform_8, window_bounds = array<i64: 1, 16, 2>}, {transform_indices = @transform_9, window_bounds = array<i64: 1, 16, 256>}, {transform_indices = @transform_10, window_bounds = array<i64: 1, 1, 16, 128>}]} {
    %c0 = arith.constant 0 : index
    %c0_0 = arith.constant 0 : index
    %c0_1 = arith.constant 0 : index
    %c0_2 = arith.constant 0 : index
    %0 = vector.load %arg2[%c0, %c0_0, %c0_1, %c0_2] : memref<1x1x16x128xf32, #tpu.memory_space<vmem>>, vector<1x1x16x128xf32>
    %1 = vector.shape_cast %0 : vector<1x1x16x128xf32> to vector<16x128xf32>
    %c0_3 = arith.constant 0 : index
    %c0_4 = arith.constant 0 : index
    %2 = vector.load %arg3[%c0_3, %c0_4] : memref<128x16xf32, #tpu.memory_space<vmem>>, vector<128x16xf32>
    %cst = arith.constant dense<0.000000e+00> : vector<16x16xf32>
    %3 = tpu.matmul %1, %2, %cst {dimension_numbers = #tpu.dot_dimension_numbers<[1], [0], [0], [1], [0, 0, 1, 1], [], []>} : vector<16x128xf32>, vector<128x16xf32>, vector<16x16xf32> -> vector<16x16xf32>
    %c0_5 = arith.constant 0 : index
    %c0_6 = arith.constant 0 : index
    %c0_7 = arith.constant 0 : index
    %4 = vector.load %arg4[%c0_5, %c0_6, %c0_7] : memref<1x2x16xf32, #tpu.memory_space<vmem>>, vector<1x2x16xf32>
    %5 = vector.shape_cast %4 : vector<1x2x16xf32> to vector<2x16xf32>
    %cst_8 = arith.constant dense<0.000000e+00> : vector<2x16xf32>
    %6 = tpu.matmul %5, %3, %cst_8 {dimension_numbers = #tpu.dot_dimension_numbers<[1], [0], [0], [1], [0, 0, 1, 1], [], []>} : vector<2x16xf32>, vector<16x16xf32>, vector<2x16xf32> -> vector<2x16xf32>
    %c0_9 = arith.constant 0 : index
    %c0_10 = arith.constant 0 : index
    %c0_11 = arith.constant 0 : index
    %7 = vector.load %arg5[%c0_9, %c0_10, %c0_11] : memref<1x2x1xf32, #tpu.memory_space<vmem>>, vector<1x2x1xf32>
    %8 = vector.shape_cast %7 : vector<1x2x1xf32> to vector<2x1xf32>
    %9 = vector.broadcast %8 : vector<2x1xf32> to vector<2x16xf32>
    %10 = arith.addf %6, %9 : vector<2x16xf32>
    %c0_12 = arith.constant 0 : index
    %c0_13 = arith.constant 0 : index
    %c0_14 = arith.constant 0 : index
    %11 = vector.load %arg6[%c0_12, %c0_13, %c0_14] : memref<1x2x16xf32, #tpu.memory_space<vmem>>, vector<1x2x16xf32>
    %12 = vector.shape_cast %11 : vector<1x2x16xf32> to vector<2x16xf32>
    %cst_15 = arith.constant dense<0.000000e+00> : vector<2x16xf32>
    %13 = tpu.matmul %12, %3, %cst_15 {dimension_numbers = #tpu.dot_dimension_numbers<[1], [0], [0], [1], [0, 0, 1, 1], [], []>} : vector<2x16xf32>, vector<16x16xf32>, vector<2x16xf32> -> vector<2x16xf32>
    %c0_16 = arith.constant 0 : index
    %c0_17 = arith.constant 0 : index
    %c0_18 = arith.constant 0 : index
    %14 = vector.load %arg7[%c0_16, %c0_17, %c0_18] : memref<1x2x1xf32, #tpu.memory_space<vmem>>, vector<1x2x1xf32>
    %15 = vector.shape_cast %14 : vector<1x2x1xf32> to vector<2x1xf32>
    %16 = vector.broadcast %15 : vector<2x1xf32> to vector<2x16xf32>
    %17 = arith.addf %13, %16 : vector<2x16xf32>
    %c0_19 = arith.constant 0 : index
    %c0_20 = arith.constant 0 : index
    %c0_21 = arith.constant 0 : index
    %18 = vector.load %arg8[%c0_19, %c0_20, %c0_21] : memref<1x16x16xf32, #tpu.memory_space<vmem>>, vector<1x16x16xf32>
    %19 = vector.shape_cast %18 : vector<1x16x16xf32> to vector<16x16xf32>
    %cst_22 = arith.constant dense<0.000000e+00> : vector<16x128xf32>
    %20 = tpu.matmul %19, %1, %cst_22 {dimension_numbers = #tpu.dot_dimension_numbers<[1], [0], [0], [1], [0, 0, 1, 1], [], []>} : vector<16x16xf32>, vector<16x128xf32>, vector<16x128xf32> -> vector<16x128xf32>
    %c0_23 = arith.constant 0 : index
    %c0_24 = arith.constant 0 : index
    %c0_25 = arith.constant 0 : index
    %21 = vector.load %arg9[%c0_23, %c0_24, %c0_25] : memref<1x16x1xf32, #tpu.memory_space<vmem>>, vector<1x16x1xf32>
    %22 = vector.shape_cast %21 : vector<1x16x1xf32> to vector<16x1xf32>
    %23 = vector.broadcast %22 : vector<16x1xf32> to vector<16x128xf32>
    %24 = arith.addf %20, %23 : vector<16x128xf32>
    %25 = vector.shape_cast %10 : vector<2x16xf32> to vector<2x16x1xf32>
    %26 = vector.shape_cast %17 : vector<2x16xf32> to vector<2x1x16xf32>
    %27 = vector.broadcast %25 : vector<2x16x1xf32> to vector<2x16x16xf32>
    %28 = vector.broadcast %26 : vector<2x1x16xf32> to vector<2x16x16xf32>
    %29 = arith.subf %27, %28 : vector<2x16x16xf32>
    %30 = math.tanh %29 : vector<2x16x16xf32>
    %31 = vector.shape_cast %30 : vector<2x16x16xf32> to vector<2x256xf32>
    %c0_26 = arith.constant 0 : index
    %c0_27 = arith.constant 0 : index
    %c0_28 = arith.constant 0 : index
    %32 = vector.load %arg10[%c0_26, %c0_27, %c0_28] : memref<1x16x2xf32, #tpu.memory_space<vmem>>, vector<1x16x2xf32>
    %33 = vector.shape_cast %32 : vector<1x16x2xf32> to vector<16x2xf32>
    %cst_29 = arith.constant dense<0.000000e+00> : vector<16x256xf32>
    %34 = tpu.matmul %33, %31, %cst_29 {dimension_numbers = #tpu.dot_dimension_numbers<[1], [0], [0], [1], [0, 0, 1, 1], [], []>} : vector<16x2xf32>, vector<2x256xf32>, vector<16x256xf32> -> vector<16x256xf32>
    %c0_30 = arith.constant 0 : index
    %c0_31 = arith.constant 0 : index
    %c0_32 = arith.constant 0 : index
    %35 = vector.load %arg11[%c0_30, %c0_31, %c0_32] : memref<1x16x256xf32, #tpu.memory_space<vmem>>, vector<1x16x256xf32>
    %36 = vector.shape_cast %35 : vector<1x16x256xf32> to vector<16x256xf32>
    %37 = arith.addf %34, %36 : vector<16x256xf32>
    %38 = vector.shape_cast %24 : vector<16x128xf32> to vector<16x8x16xf32>
    %39 = vector.shape_cast %37 : vector<16x256xf32> to vector<16x16x16xf32>
    "tpu.trace_start"() <{level = 10 : i32, message = "otv,ouv->otu"}> : () -> ()
    %cst_33 = arith.constant dense<0.000000e+00> : vector<16x8x16xf32>
    %40 = tpu.matmul %38, %39, %cst_33 {dimension_numbers = #tpu.dot_dimension_numbers<[2], [2], [1], [1], [0, 0, 0, 1, 1, 1], [0], [0]>} : vector<16x8x16xf32>, vector<16x16x16xf32>, vector<16x8x16xf32> -> vector<16x8x16xf32>
    "tpu.trace_stop"() : () -> ()
    %41 = vector.shape_cast %40 : vector<16x8x16xf32> to vector<16x128xf32>
    %c0_34 = arith.constant 0 : index
    %c0_35 = arith.constant 0 : index
    %c0_36 = arith.constant 0 : index
    %c0_37 = arith.constant 0 : index
    %42 = vector.load %arg12[%c0_34, %c0_35, %c0_36, %c0_37] : memref<1x1x16x128xf32, #tpu.memory_space<vmem>>, vector<1x1x16x128xf32>
    %43 = vector.shape_cast %42 : vector<1x1x16x128xf32> to vector<16x128xf32>
    %44 = vector.shape_cast %41 : vector<16x128xf32> to vector<1x1x16x128xf32>
    tpu.vector_store %arg12[%c0_34, %c0_35, %c0_36, %c0_37], %44 {strides = array<i32>} : memref<1x1x16x128xf32, #tpu.memory_space<vmem>>, vector<1x1x16x128xf32>,
    return
  }
  func.func @transform_0(%arg0: i32, %arg1: i32) -> (i32, i32, i32, i32) {
    %c0_i32 = arith.constant 0 : i32
    %c0_i32_0 = arith.constant 0 : i32
    %c0_i32_1 = arith.constant 0 : i32
    return %arg0, %arg1, %c0_i32, %c0_i32_0 : i32, i32, i32, i32
  }
  func.func @transform_1(%arg0: i32, %arg1: i32) -> (i32, i32) {
    %c0_i32 = arith.constant 0 : i32
    %c0_i32_0 = arith.constant 0 : i32
    %c0_i32_1 = arith.constant 0 : i32
    return %c0_i32, %c0_i32_0 : i32, i32
  }
  func.func @transform_2(%arg0: i32, %arg1: i32) -> (i32, i32, i32) {
    %c0_i32 = arith.constant 0 : i32
    %c0_i32_0 = arith.constant 0 : i32
    %c0_i32_1 = arith.constant 0 : i32
    return %arg0, %c0_i32, %c0_i32_0 : i32, i32, i32
  }
  func.func @transform_3(%arg0: i32, %arg1: i32) -> (i32, i32, i32) {
    %c0_i32 = arith.constant 0 : i32
    %c0_i32_0 = arith.constant 0 : i32
    %c0_i32_1 = arith.constant 0 : i32
    return %arg0, %c0_i32, %c0_i32_0 : i32, i32, i32
  }
  func.func @transform_4(%arg0: i32, %arg1: i32) -> (i32, i32, i32) {
    %c0_i32 = arith.constant 0 : i32
    %c0_i32_0 = arith.constant 0 : i32
    %c0_i32_1 = arith.constant 0 : i32
    return %arg0, %c0_i32, %c0_i32_0 : i32, i32, i32
  }
  func.func @transform_5(%arg0: i32, %arg1: i32) -> (i32, i32, i32) {
    %c0_i32 = arith.constant 0 : i32
    %c0_i32_0 = arith.constant 0 : i32
    %c0_i32_1 = arith.constant 0 : i32
    return %arg0, %c0_i32, %c0_i32_0 : i32, i32, i32
  }
  func.func @transform_6(%arg0: i32, %arg1: i32) -> (i32, i32, i32) {
    %c0_i32 = arith.constant 0 : i32
    %c0_i32_0 = arith.constant 0 : i32
    %c0_i32_1 = arith.constant 0 : i32
    return %arg0, %c0_i32, %c0_i32_0 : i32, i32, i32
  }
  func.func @transform_7(%arg0: i32, %arg1: i32) -> (i32, i32, i32) {
    %c0_i32 = arith.constant 0 : i32
    %c0_i32_0 = arith.constant 0 : i32
    %c0_i32_1 = arith.constant 0 : i32
    return %arg0, %c0_i32, %c0_i32_0 : i32, i32, i32
  }
  func.func @transform_8(%arg0: i32, %arg1: i32) -> (i32, i32, i32) {
    %c0_i32 = arith.constant 0 : i32
    %c0_i32_0 = arith.constant 0 : i32
    %c0_i32_1 = arith.constant 0 : i32
    return %arg0, %c0_i32, %c0_i32_0 : i32, i32, i32
  }
  func.func @transform_9(%arg0: i32, %arg1: i32) -> (i32, i32, i32) {
    %c0_i32 = arith.constant 0 : i32
    %c0_i32_0 = arith.constant 0 : i32
    %c0_i32_1 = arith.constant 0 : i32
    return %arg0, %c0_i32, %c0_i32_0 : i32, i32, i32
  }
  func.func @transform_10(%arg0: i32, %arg1: i32) -> (i32, i32, i32, i32) {
    %c0_i32 = arith.constant 0 : i32
    %c0_i32_0 = arith.constant 0 : i32
    %c0_i32_1 = arith.constant 0 : i32
    return %arg0, %arg1, %c0_i32, %c0_i32_0 : i32, i32, i32, i32
  }
}

</mosaic_0001>

<bundles_post_ra>
// kernel: tpu_custom_call.1
= control target key start
LH: loop header
LB: loop body
LE: loop exit
PB: predicated region body
PF: predicated region fallthrough
CT: control target
= control target key end

     0   :  { %s6014_s0 = inlined_call_operand.vmem [shape: f32[4,2,16,128], index: 0, kind: input, shape index: {}]   ;;  %s6015_s1 = inlined_call_operand.vmem [shape: f32[128,16], index: 1, kind: input, shape index: {}]   ;;  %s6016_s2 = inlined_call_operand.hbm [shape: f32[4,2,16], index: 2, kind: input, shape index: {}]   ;;  %s6017_s3 = inlined_call_operand.vmem [shape: f32[4,2,1], index: 3, kind: input, shape index: {}]   ;;  %s6018_s4 = inlined_call_operand.hbm [shape: f32[4,2,16], index: 4, kind: input, shape index: {}]   ;;  %s6019_s5 = inlined_call_operand.vmem [shape: f32[4,2,1], index: 5, kind: input, shape index: {}]   ;;  %s6020_s6 = inlined_call_operand.vmem [shape: f32[4,16,16], index: 6, kind: input, shape index: {}]   ;;  %s6021_s7 = inlined_call_operand.vmem [shape: f32[4,16,1], index: 7, kind: input, shape index: {}]   ;;  %s6022_s8 = inlined_call_operand.vmem [shape: f32[4,16,2], index: 8, kind: input, shape index: {}]   ;;  %s6023_s9 = inlined_call_operand.vmem [shape: f32[4,16,256], index: 9, kind: input, shape index: {}]   ;;  %s6024_s10 = inlined_call_operand.hbm [shape: f32[4,2,16,128], index: 10, kind: output, shape index: {}]  }
   0x1   :  { %6036 = sst [smem:[#allocation19_spill]] %s6016_s2 }
   0x2   :  { %6037 = sst [smem:[#allocation20_spill]] %s6018_s4 }
   0x3   :  { %6038 = sst [smem:[#allocation21_spill]] %s6023_s9 }
   0x4   :  { %6039 = sst [smem:[#allocation22_spill]] %s6024_s10 }
   0x5   :  { %15 = vsyncpa [#allocation3], 0 }
   0x6   :  { %17 = vsyncpa [#allocation3 + $0x1], 0 }
   0x7   :  { %18 = vsyncpa [#allocation6], 0 }
   0x8   :  { %20 = vsyncpa [#allocation6 + $0x1], 0 }
   0x9   :  { %21 = vsyncpa [#allocation4], 0 }
   0xa   :  { %23 = vsyncpa [#allocation4 + $0x1], 0  ;;  %s4902_s13 = smov 0   ;;  %s4904_s14 = smov 0  }
   0xb   :  { %s4906_s15 = smov 0   ;;  %s4908_s16 = smov 0  }
   0xc   :  { %s4910_s17 = smov 0   ;;  %s4912_s18 = smov 0  }
   0xd   :  { %s4914_s19 = smov 0   ;;  %s4916_s20 = smov 0  }
   0xe   :  { %s4918_s21 = smov 0   ;;  %s4920_s22 = smov 0  }
   0xf   :  { %s4922_s23 = smov 0  }
  0x10 LB: > { %6040 = sst [smem:[#allocation11_spill]] %s4794_s15  ;;  %s4066_s24 = sadd.s32 4294967295, %s4826_s23   ;;  %s4826_s23 = sphi %s4922_s23, %s29_s23   ;;  %s4822_s22 = sphi %s4920_s22, %s6075_s22   ;;  %s4818_s21 = sphi %s4918_s21, %s6074_s21   ;;  %s4814_s20 = sphi %s4916_s20, %s6073_s20   ;;  %s4810_s19 = sphi %s4914_s19, %s6072_s19   ;;  %s4806_s18 = sphi %s4912_s18, %s6071_s18   ;;  %s4802_s17 = sphi %s4910_s17, %s6079_s17   ;;  %s4798_s16 = sphi %s4908_s16, %s6078_s16   ;;  %s4794_s15 = sphi %s4906_s15, %s6069_s15   ;;  %s4790_s14 = sphi %s4904_s14, %s6077_s14   ;;  %s4786_s13 = sphi %s4902_s13, %s6076_s13  }
  0x11   : > { %6041 = sst [smem:[#allocation12_spill]] %s4806_s18  ;;  %s4067_s25 = sadd.s32 4294967294, %s4826_s23  }
  0x12   : > { %6042 = sst [smem:[#allocation13_spill]] %s4818_s21  ;;  %s38_s26 = sadd.s32 1, %s4818_s21 }
  0x13   : > { %6043 = sst [smem:[#allocation14_spill]] %s4822_s22  ;;  %s41_s27 = sadd.s32 1, %s4822_s22 }
  0x14   : > { %p39_p0 = scmp.ge.s32.totalorder %s38_s26, 2  ;;  %s97_s28 = sadd.s32 1, %s4806_s18 }
  0x15   : > { %p104_p1 = scmp.ne.s32.totalorder %s4806_s18, %s4802_s17  ;;  %p105_p2 = scmp.eq.s32.totalorder %s4826_s23, 0 }
  0x16   : > { %s6081_s26 = smov (%p39_p0, %s38_s26), 0  ;;  %s6083_s27 = smov (!%p39_p0, %s41_s27), %s4822_s22 }
  0x17   : > { %6044 = sst [smem:[#allocation15_spill]] %s6081_s26  ;;  %p4966_p3 = por %p105_p2, %p104_p1 }
  0x18   : > { %p110_p4 = scmp.ne.s32.totalorder %s4802_s17, %s4798_s16  ;;  %p43_p5 = scmp.ge.s32.totalorder %s6083_s27, 4 }
  0x19   : > { %p111_p6 = scmp.eq.s32.totalorder %s4066_s24, 0  ;;  %s303_s30 = ssub.s32 %s4818_s21, %s6081_s26 }
  0x1a   : > { %s307_s11 = sadd.s32 1, %s4794_s15  ;;  %s6085_s27 = smov (%p43_p5, %s6083_s27), 0 }
  0x1b   : > { %6046 = sst [smem:[#allocation16_spill]] %s6085_s27  ;;  %p4976_p7 = por %p111_p6, %p110_p4 }
  0x1c   : > { %p317_p8 = scmp.ne.s32.totalorder %s4794_s15, %s4790_s14  ;;  %s94_s10 = ssub.s32 %s4822_s22, %s6085_s27 }
  0x1d   : > { %s6047_s12 = scalar_select %p4976_p7, 1, 0 }
  0x1e   : > { %p318_p9 = scmp.eq.s32.totalorder %s4066_s24, 7  ;;  %p95_p10 = scmp.eq.s32.totalorder %s94_s10, 0 }
  0x1f   : > { %s304_s16 = sor.u32 %s303_s30, %s94_s10  ;;  %p323_p13 = scmp.ne.s32.totalorder %s4790_s14, %s4786_s13 }
  0x20   : > { %p305_p11 = scmp.eq.s32.totalorder %s304_s16, 0  ;;  %p4984_p12 = por %p318_p9, %p317_p8 }
  0x21   : > { %s4989_s21 = scalar_select %p95_p10, %s4806_s18, %s97_s28  }
  0x22   : > { %s6048_s26 = scalar_select %p4984_p12, 1, 0 }
  0x23   : > { %6049 = sst [smem:[#allocation17_spill]] %s4989_s21  ;;  %p324_p0 = scmp.eq.s32.totalorder %s4067_s25, 7 }
  0x24   : > { %s4992_s9 = scalar_select %p305_p11, %s4794_s15, %s307_s11  }
  0x25   : > { %p4524_p1 = scmp.lt.s32.totalorder %s4826_s23, 8  ;;  %p4997_p2 = por %p324_p0, %p323_p13 }
  0x26   : > { %6050 = sst [smem:[#allocation18_spill]] %s4992_s9  ;;  %s5002_s10 = sand.u32 1, %s4806_s18  }
  0x27   : > { %s6051_s27 = scalar_select %p4997_p2, 1, 0 }
  0x28   : > { %s6030_s24 = sshll.u32 %s5002_s10, 1  ;;  %s6031_s30 = sshll.u32 %s4822_s22, 5 }
  0x29   : > { %s6052_s2 = sld [smem:[#allocation19_spill]]  ;;  %s363_s25 = scalar_lea.vmem [#allocation2], %s6030_s24 }
  0x2a   : > { %s370_s21 = sshll.u32 %s363_s25, 4  ;;  %p5019_p4 = pnand %p4524_p1, %p4966_p3  ;;  %s5015_s21 = int_to_ptr.vmem [resolvable:$true] %s370_s21 }
  0x2b   : > { %s360_s16 = scalar_lea.sflag [#allocation3], %s5002_s10 }
  0x2c   : > { %p4642_p9 = pneg %p5019_p4 }
  0x2f   : > { %s5011_s11 = scalar_lea.hbm %s6052_s2, %s6031_s30  ;;  %s4645_s29 = scalar_lea.hbm %s6052_s2, 128 }
  0x30   : > { %s4640_s28 = scalar_lea.hbm %s5011_s11, 32  ;;  %p4646_p3 = scmp.lt.u32.totalorder %s5011_s11, %s6052_s2 }
  0x31   : > { %p4641_p8 = scmp.ne.s32.totalorder %s5011_s11, %s4640_s28  ;;  %p4647_p13 = scmp.lt.u32.totalorder %s4645_s29, %s4640_s28 }
  0x32   : > { %p4649_p1 = scmp.lt.u32.totalorder %s4640_s28, %s5011_s11 }
  0x33   : > { %p4643_p10 = pnand %p4642_p9, %p4641_p8  ;;  %p4648_p0 = por %p4647_p13, %p4646_p3 }
  0x35   : > { %p4644_p11 = pneg %p4643_p10  ;;  %p4650_p5 = por %p4649_p1, %p4648_p0 }
  0x37   : > { %p4651_p6 = pnand %p4650_p5, %p4644_p11 }
  0x39   : > { %4654 = shalt.err (!%p4651_p6)
}
  0x3a   : > { %s4655_s15 = scalar_lea.vmem %s5015_s21, 32  ;;  %s4828_s24 = smov [#allocation2]  }
  0x3b   : > { %p4656_p8 = scmp.ne.s32.totalorder %s5015_s21, %s4655_s15  ;;  %s4660_s25 = sshll.u32 %s4828_s24, 4  ;;  %s4661_s25 = int_to_ptr.vmem [resolvable:$false] %s4660_s25 }
  0x3c   : > { %s4662_s9 = scalar_lea.vmem %s4661_s25, 64  ;;  %p4663_p12 = scmp.lt.s32.totalorder %s5015_s21, %s4661_s25 }
  0x3d   : > { %p4658_p10 = pnand %p4656_p8, %p4642_p9  ;;  %p4664_p3 = scmp.lt.s32.totalorder %s4662_s9, %s4655_s15 }
  0x3f   : > { %p4659_p2 = pneg %p4658_p10  ;;  %p4665_p13 = por %p4664_p3, %p4663_p12 }
  0x41   : > { %p4666_p0 = pnand %p4665_p13, %p4659_p2 }
  0x43   : > { %4669 = shalt.err (!%p4666_p0)
}
  0x44   : > { %4516 = dma.hbm_to_vmem [thread:$0]  (!%p5019_p4), %s5011_s11, 32, %s5015_s21, %s360_s16  }
  0x45   : > { %p6054_p5 = scmp.lt.s32.totalorder %s4826_s23, 9  ;;  %p6055_p6 = scmp.ge.s32.totalorder %s4826_s23, 1 }
  0x46   : > { %s6057_s15 = sshll.u32 %s4822_s22, 5  ;;  %s6058_s4 = sld [smem:[#allocation20_spill]] }
  0x47   : > { %p5055_p11 = pnand %p6055_p6, %p6054_p5  ;;  %s6059_s25 = sshll.u32 %s5002_s10, 1 }
  0x48   : > { %s388_s9 = scalar_lea.vmem [#allocation5], %s6059_s25  ;;  %s385_s21 = scalar_lea.sflag [#allocation6], %s5002_s10 }
  0x49   : > { %s6056_s30 = scalar_select %p5055_p11, 1, 0 }
  0x4a   : > { %s395_s2 = sshll.u32 %s388_s9, 4  ;;  %s396_s2 = int_to_ptr.vmem [resolvable:$true] %s395_s2 }
  0x4c   : > { %s5064_s24 = scalar_lea.hbm %s6058_s4, %s6057_s15  ;;  %s4675_s15 = scalar_lea.hbm %s6058_s4, 128 }
  0x4d   : > { %s4670_s11 = scalar_lea.hbm %s5064_s24, 32  ;;  %p4676_p8 = scmp.lt.u32.totalorder %s5064_s24, %s6058_s4 }
  0x4e   : > { %p4671_p12 = scmp.ne.s32.totalorder %s5064_s24, %s4670_s11  ;;  %p4677_p10 = scmp.lt.u32.totalorder %s4675_s15, %s4670_s11 }
  0x4f   : > { %p4679_p13 = scmp.lt.u32.totalorder %s4670_s11, %s5064_s24 }
  0x50   : > { %p4673_p2 = pnand %p4671_p12, %p4642_p9  ;;  %p4678_p3 = por %p4677_p10, %p4676_p8 }
  0x52   : > { %p4674_p1 = pneg %p4673_p2  ;;  %p4680_p0 = por %p4679_p13, %p4678_p3 }
  0x54   : > { %p4681_p5 = pnand %p4680_p0, %p4674_p1 }
  0x56   : > { %4684 = shalt.err (!%p4681_p5)
}
  0x57   : > { %s4685_s10 = scalar_lea.vmem %s396_s2, 32  ;;  %s4829_s25 = smov [#allocation5]  }
  0x58   : > { %p4686_p6 = scmp.ne.s32.totalorder %s396_s2, %s4685_s10  ;;  %s4690_s22 = sshll.u32 %s4829_s25, 4  ;;  %s4691_s22 = int_to_ptr.vmem [resolvable:$false] %s4690_s22 }
  0x59   : > { %s4692_s9 = scalar_lea.vmem %s4691_s22, 64  ;;  %p4693_p7 = scmp.lt.s32.totalorder %s396_s2, %s4691_s22 }
  0x5a   : > { %p4688_p12 = pnand %p4686_p6, %p4642_p9  ;;  %p4694_p11 = scmp.lt.s32.totalorder %s4692_s9, %s4685_s10 }
  0x5c   : > { %p4689_p2 = pneg %p4688_p12  ;;  %p4695_p8 = por %p4694_p11, %p4693_p7 }
  0x5e   : > { %p4696_p10 = pnand %p4695_p8, %p4689_p2 }
  0x60   : > { %4699 = shalt.err (!%p4696_p10)
}
  0x61   : > { %4519 = dma.hbm_to_vmem [thread:$0]  (!%p5019_p4), %s5064_s24, 32, %s396_s2, %s385_s21  }
  0x62   : > { %p6060_p1 = scmp.ne.s32.totalorder %s6056_s30, 0 }
  0x63   : > { %s445_s11 = sand.u32 (!%p6060_p1), 1, %s4802_s17   ;;  %p6061_p9 = scmp.ne.s32.totalorder (!%p6060_p1), %s6047_s12, 0 }
  0x64   : > { %443 = sbr.rel (%p6060_p1) target bundleno = 1678 (0x68e), region = 60  ;;  %s4075_s16 = sshll.u32 (!%p6060_p1), %s445_s11, 1 }
  0x65   : > { %s446_s15 = scalar_lea.sflag (!%p6060_p1), [#allocation3], %s445_s11  ;;  %s5091_s28 = scalar_lea.vmem (!%p6060_p1), [#allocation2], %s4075_s16 }
  0x6b   : > { %4773 = dma.done.wait (%p6061_p9), %s446_s15, 32  }
  0x6c   : > { %4775 = vsyncadd (%p6061_p9), %s446_s15, 4294967264  ;;  %s455_s29 = scalar_lea.sflag [#allocation6], %s445_s11  ;;  %s5097_s18 = scalar_lea.vmem [#allocation5], %s4075_s16 }
  0x6d   : > { %4777 = dma.done.wait (%p6061_p9), %s455_s29, 32  }
  0x6e   : > { %4779 = vsyncadd (%p6061_p9), %s455_s29, 4294967264  ;;  %p537_p7 = scmp.lt.s32.totalorder %s4814_s20, 3  ;;  %p539_p4 = scmp.lt.s32.totalorder %s4810_s19, 1  ;;  %v576_v0 = vld [vmem:[%s6015_s1] sm:$0xff]  ;;  %v577_v1 = vld [vmem:[%s6015_s1 + $0x8] sm:$0xff]  ;;  %v4830_v27 = vmov 0.0|0.0   ;;  %v923_v39 = vlaneseq }
  0x6f   : > { %v578_v2 = vld [vmem:[%s6015_s1 + $0x10] sm:$0xff]  ;;  %v4401_v3 = vpack.c.bf16 %v577_v1, %v576_v0  ;;  %v579_v4 = vld [vmem:[%s6015_s1 + $0x18] sm:$0xff]  ;;  %v580_v6 = vld [vmem:[%s6015_s1 + $0x20] sm:$0xff]  ;;  %4433 = vmatprep.subr.bf16.mxu1 %v4830_v27  ;;  %vm4831_vm0 = vmmov 0   ;;  %v4832_v28 = vmov 0.0   ;;  %v4833_v29 = vmov 0  }
  0x70   : > { %s5106_s2 = scalar_select %p537_p7, %s4814_s20, 3  ;;  %v4405_v5 = vpack.c.bf16 %v579_v4, %v578_v2  ;;  %v581_v7 = vld [vmem:[%s6015_s1 + $0x28] sm:$0xff]  ;;  %v582_v11 = vld [vmem:[%s6015_s1 + $0x30] sm:$0xff]  ;;  %v583_v12 = vld [vmem:[%s6015_s1 + $0x38] sm:$0xff]  ;;  %4272 = vmatprep.mubr.msk.f32.mxu1 %vm4831_vm0, %v4832_v28  ;;  %4630 = vset.pattern.permute.xlu0 %v4833_v29  ;;  %vm674_vm1 = vcmask 130048   ;;  %v924_v40 = vshrl.u32 %v923_v39, 7 }
  0x71   : > { %s540_s30 = scalar_select %p539_p4, %s4810_s19, 1  ;;  %4402 = vmatprep.subr.bf16.mxu0 %v4401_v3  ;;  %v4409_v8 = vpack.c.bf16 %v581_v7, %v580_v6  ;;  %v4413_v14 = vpack.c.bf16 %v583_v12, %v582_v11  ;;  %v584_v15 = vld [vmem:[%s6015_s1 + $0x40] sm:$0xff]  ;;  %v585_v16 = vld [vmem:[%s6015_s1 + $0x48] sm:$0xff]  ;;  %v586_v18 = vld [vmem:[%s6015_s1 + $0x50] sm:$0xff]  ;;  %4631 = vset.pattern.permute.xlu1 %v4833_v29  ;;  %v4834_v41 = vmov 1966171168  }
  0x72   : > { %s4079_s24 = sshll.u32 %s5106_s2, 2  ;;  %4404 = vmatpush3.bf16.msra.mxu0 %v4401_v3  ;;  %v4417_v17 = vpack.c.bf16 %v585_v16, %v584_v15  ;;  %v587_v19 = vld [vmem:[%s6015_s1 + $0x58] sm:$0xff]  ;;  %v588_v21 = vld [vmem:[%s6015_s1 + $0x60] sm:$0xff]  ;;  %v589_v22 = vld [vmem:[%s6015_s1 + $0x68] sm:$0xff]  ;;  %v947_v42 = vunpack.c.l.s4 %v4834_v41  ;;  %v925_v45 = vsub.s32 0, %v924_v40  ;;  %v936_v51 = vsub.s32 1, %v924_v40 }
  0x73   : > { %s4078_s21 = sshll.u32 %s540_s30, 1  ;;  %4406 = vmatprep.subr.bf16.mxu0 %v4405_v5  ;;  %v4421_v20 = vpack.c.bf16 %v587_v19, %v586_v18  ;;  %v4425_v23 = vpack.c.bf16 %v589_v22, %v588_v21  ;;  %v590_v24 = vld [vmem:[%s6015_s1 + $0x70] sm:$0xff]  ;;  %v591_v25 = vld [vmem:[%s6015_s1 + $0x78] sm:$0xff]  ;;  %v667_v35 = vld [vmem:[%s5091_s28] sm:$0x3]  ;;  %s4839_s29 = smov 48  }
  0x74   : > { %s543_s10 = sadd.s32 %s4079_s24, %s4078_s21  ;;  %v4429_v26 = vpack.c.bf16 %v591_v25, %v590_v24  ;;  %s4081_s24 = sshll.u32 %s5106_s2, 1  ;;  %v748_v36 = vld [vmem:[%s5097_s18] sm:$0x3]  ;;  %v948_v44 = vunpack.c.0.s8 %v947_v42  ;;  %vm1175_vm2 = vcmask 261120   ;;  %vm1177_vm3 = vcmask 392192   ;;  %vm5466_vm10 = vmpackc.low %vm674_vm1, %vm674_vm1 }
  0x75   : > { %s4080_s15 = sshll.u32 %s543_s10, 3  ;;  %s549_s22 = scalar_lea.vmem %s6017_s3, %s4081_s24  ;;  %vm1179_vm4 = vcmask 523264   ;;  %vm1181_vm5 = vcmask 654336   ;;  %vm1183_vm6 = vcmask 785408   ;;  %vm1185_vm7 = vcmask 916480  }
  0x76   : > { %s545_s12 = scalar_lea.vmem %s6014_s0, %s4080_s15  ;;  %4408 = vmatpush3.bf16.msra.mxu0 %v4405_v5  ;;  %s553_s4 = scalar_lea.vmem %s6019_s5, %s4081_s24  ;;  %v668_v30 = vld [vmem:[%s549_s22] sm:$0x3]  ;;  %v951_v49 = vsub.s32 %v948_v44, %v924_v40  ;;  %v4835_v5 = vmov 1983009808   ;;  %vm1207_vm8 = vcmask 1041408   ;;  %vm1200_vm9 = vcmask 15360  }
  0x77   : > { %v574_v9 = vld [vmem:[%s545_s12] sm:$0xff]  ;;  %v575_v10 = vld [vmem:[%s545_s12 + $0x8] sm:$0xff]  ;;  %4410 = vmatprep.subr.bf16.mxu0 %v4409_v8  ;;  %671 = vperm.xlu0 %4630, %v668_v30   ;;  %s5182_s10 = sshll.u32 %s5106_s2, 4  ;;  %v988_v6 = vunpack.c.l.s4 %v4835_v5  ;;  %s4837_s18 = smov 32  }
  0x78   : > { %4265 = vmatprep.mubr.f32.mxu0 %v574_v9  ;;  %v4439_v13 = vpack.c.bf16 %v575_v10, %v574_v9  ;;  %v749_v31 = vld [vmem:[%s553_s4] sm:$0x3]  ;;  %s558_s28 = scalar_lea.vmem %s6020_s6, %s5182_s10  ;;  %s4838_s15 = smov 16  }
  0x79   : > { %v828_v37 = vld [vmem:[%s558_s28] sm:$0xff]  ;;  %v829_v38 = vld [vmem:[%s558_s28 + $0x8] sm:$0xff]  ;;  %v989_v9 = vunpack.c.0.s8 %v988_v6  ;;  %s4840_s30 = smov 64   ;;  %s4841_s24 = smov 96  }
  0x7a   : > { %4412 = vmatpush3.bf16.msra.mxu0 %v4409_v8  ;;  %s4842_s21 = smov 80   ;;  %s563_s9 = scalar_lea.vmem %s6021_s7, %s5182_s10 }
  0x7b   : > { %4414 = vmatprep.subr.bf16.mxu0 %v4413_v14  ;;  %752 = vperm.xlu0 %4630, %v749_v31   ;;  %s4843_s12 = smov 112   ;;  %s568_s16 = scalar_lea.vmem %s6022_s8, %s5182_s10 }
  0x7c   : > { %s4156_s10 = sshll.u32 %s5106_s2, 5  ;;  %s6062_s22 = sld [smem:[#allocation21_spill]] }
  0x7d   : > { %s534_s2 = sand.u32 1, %s4790_s14   ;;  %s6065_s4 = sld [smem:[#allocation22_spill]] }
  0x7e   : > { %4416 = vmatpush3.bf16.msra.mxu0 %v4413_v14  ;;  %p6066_p3 = scmp.ne.s32.totalorder %s6048_s26, 0  ;;  %s4844_s28 = smov [#allocation7]  }
  0x7f   : > { %4418 = vmatprep.subr.bf16.mxu0 %v4417_v17  ;;  %s4704_s25 = sshll.u32 %s4844_s28, 4  ;;  %s4705_s25 = int_to_ptr.vmem [resolvable:$false] %s4704_s25 }
  0x82   : > { %4420 = vmatpush3.bf16.msra.mxu0 %v4417_v17 }
  0x83   : > { %4422 = vmatprep.subr.bf16.mxu0 %v4421_v20 }
  0x86   : > { %4424 = vmatpush3.bf16.msra.mxu0 %v4421_v20 }
  0x87   : > { %4426 = vmatprep.subr.bf16.mxu0 %v4425_v23 }
  0x8a   : > { %4428 = vmatpush3.bf16.msra.mxu0 %v4425_v23 }
  0x8b   : > { %4430 = vmatprep.subr.bf16.mxu0 %v4429_v26 }
  0x8e   : > { %4432 = vmatpush3.bf16.msra.mxu0 %v4429_v26 }
  0x8f   : > { %4451 = vmatprep.subr.bf16.mxu0 %v4830_v27 }
  0x91   : > { %4266 = vmatmul.mubr.f32.vlgmr.msra.gmra.mrb[0].mxu0 %v575_v10  ;;  %v4836_v10 = vmov 1934713408  }
  0x92   : > { %4307 = vmatprep.mubr.msk.f32.mxu0 %vm4831_vm0, %v4832_v28  ;;  %v1019_v11 = vunpack.c.l.s4 %v4836_v10 }
  0x94   : > { %v1020_v14 = vunpack.c.0.s8 %v1019_v11 }
  0x96   : > { %v5194_v18 = vsub.s32 %v1020_v14, %v924_v40 }
  0xf6   : > { %v672_v43 = vpop.permute.xlu0 %671 }
  0xfa   : > { %v753_v52 = vpop.permute.xlu0 %752 }
 0x164   : > { %v4267_v32 = vpop.f32.mrb[0].mxu0 }
 0x165   : > { %v658_v33 = vpop.f32.mrb[1].mxu0 }
 0x166   : > { %v4434_v34 = vpack.c.bf16 %v4267_v32, %v658_v33 }
 0x168   : > { %4435 = vmatpush3.bf16.msra.mxu1 %v4434_v34 }
 0x169   : > { %4436 = vmatprep.subr.bf16.mxu1 %v4830_v27 }
 0x16b   : > { %4273 = vmatmul.mubr.msk.f32.vlgmr.msra.gmra.mrb[0].mxu1 %vm674_vm1, %v667_v35 }
 0x16c   : > { %4438 = vmatpush3.bf16.msra.mxu1 %v4434_v34  ;;  %4279 = vmatprep.mubr.msk.f32.mxu1 %vm4831_vm0, %v4832_v28 }
 0x16d   : > { %4440 = vmatprep.subr.bf16.mxu1 %v4439_v13 }
 0x16f   : > { %4280 = vmatmul.mubr.msk.f32.vlgmr.msra.gmra.mrb[2].mxu1 %vm674_vm1, %v748_v36 }
 0x170   : > { %4442 = vmatpush3.bf16.msra.mxu1 %v4439_v13  ;;  %4286 = vmatprep.mubr.msk.f32.mxu1 %vm674_vm1, %v828_v37  ;;  %v5191_v13 = vsub.s32 %v989_v9, %v924_v40 }
 0x173   : > { %4287 = vmatmul.mubr.msk.f32.vlgmr.msra.gmra.mrb[4].mxu1 %vm674_vm1, %v829_v38 }
 0x174   : > { %1278 = vmatprep.mubr.f32.mxu1 %v4832_v28 }
 0x23e   : > { %v744_v46 = vpop.f32.mrb[0].mxu1 }
 0x23f   : > { %v745_v47 = vadd.f32 %v744_v46, %v672_v43  ;;  %v4274_v48 = vpop.f32.mrb[1].mxu1 }
 0x241   : > { %v926_v50 = vrot.slane %v745_v47, %v925_v45  ;;  %v937_v57 = vrot.slane %v745_v47, %v936_v51 }
 0x242   : > { %v824_v53 = vpop.f32.mrb[2].mxu1 }
 0x243   : > { %v825_v54 = vadd.f32 %v824_v53, %v753_v52  ;;  %928 = vbcast.lane.b32.xlu0 %v926_v50, 256  ;;  %932 = vbcast.lane.b32.xlu1 %v926_v50, 264  ;;  %v4281_v55 = vpop.f32.mrb[3].mxu1 }
 0x245   : > { %v952_v56 = vrot.slane %v825_v54, %v951_v49 }
 0x246   : > { %v5227_v52 = vpop.f32.mrb[4].mxu1 }
 0x247   : > { %v953_v58 = vcombine.high %v952_v56, %v952_v56  ;;  %943 = vbcast.lane.b32.xlu1 %v937_v57, 264  ;;  %v960_v59 = vrot.slane %v952_v56, %v951_v49 }
 0x249   : > { %v971_v60 = vrot.slane %v960_v59, %v925_v45  ;;  %v967_v61 = vrot.slane %v953_v58, %v951_v49  ;;  %v914_v59 = vpop.f32.mrb[5].mxu1 }
 0x24b   : > { %939 = vbcast.lane.b32.xlu1 %v937_v57, 256  ;;  %v975_v62 = vrot.slane %v967_v61, %v925_v45  ;;  %v830_v57 = vld [vmem:[%s563_s9] sm:$0xff] }
 0x2b5   : > { %v933_v63 = vpop.permute.xlu1 %932  ;;  %v929_v0 = vpop.permute.xlu0 %928 }
 0x2b6   : > { %v979_v1 = vsub.f32 %v933_v63, %v971_v60  ;;  %v978_v2 = vsub.f32 %v929_v0, %v971_v60  ;;  %v831_v60 = vld [vmem:[%s563_s9 + $0x8] sm:$0xff]  ;;  %s5275_s9 = scalar_lea.vmem %s6062_s22, %s4156_s10  ;;  %s4706_s22 = scalar_lea.vmem %s4705_s25, 512 }
 0x2b8   : > { %4632 = vtanh.f32 %v979_v1 }
 0x2b9   : > { %v944_v3 = vpop.permute.xlu1 %943 }
 0x2ba   : > { %v981_v4 = vsub.f32 %v944_v3, %v975_v62 }
 0x2bc   : > { %4634 = vtanh.f32 %v981_v4 }
 0x2bd   : > { %4636 = vtanh.f32 %v978_v2  ;;  %v940_v7 = vpop.permute.xlu1 %939 }
 0x2be   : > { %v980_v8 = vsub.f32 %v940_v7, %v975_v62 }
 0x2c0   : > { %4638 = vtanh.f32 %v980_v8 }
 0x2c2   : > { %v4633_v12 = vpop.eup %4632 }
 0x2c3   : > { %v1052_v15 = vcombine.high %v4633_v12, %v4832_v28  ;;  %v1059_v19 = vrot.slane %v4633_v12, %v5191_v13 }
 0x2c5   : > { %v1066_v24 = vrot.slane %v1052_v15, %v5191_v13 }
 0x2c6   : > { %v4635_v16 = vpop.eup %4634 }
 0x2c7   : > { %v4637_v17 = vpop.eup %4636  ;;  %v1074_v20 = vrot.slane %v4635_v16, %v5191_v13  ;;  %v1067_v21 = vcombine.high %v4635_v16, %v4832_v28 }
 0x2c8   : > { %v993_v29 = vrot.slane %v4637_v17, %v5191_v13  ;;  %v986_v30 = vcombine.high %v4637_v17, %v4832_v28 }
 0x2c9   : > { %v1083_v22 = vcombine.high %v1059_v19, %v1074_v20  ;;  %v1082_v23 = vcombine.low %v1059_v19, %v1074_v20  ;;  %v1081_v25 = vrot.slane %v1067_v21, %v5191_v13 }
 0x2ca   : > { %v4639_v26 = vpop.eup %4638  ;;  %v1000_v39 = vrot.slane %v986_v30, %v5191_v13  ;;  %v1195_v30 = vld [vmem:[%s568_s16 + $0x8] sm:$0xff] }
 0x2cb   : > { %v1097_v31 = vrot.slane %v1083_v22, %v5194_v18  ;;  %v1090_v32 = vrot.slane %v1082_v23, %v5194_v18  ;;  %v1008_v33 = vrot.slane %v4639_v26, %v5191_v13  ;;  %v1098_v34 = vcombine.low %v1066_v24, %v1081_v25 }
 0x2cc   : > { %v1099_v35 = vcombine.high %v1066_v24, %v1081_v25  ;;  %v1001_v36 = vcombine.high %v4639_v26, %v4832_v28  ;;  %v1194_v26 = vld [vmem:[%s568_s16] sm:$0xff]  ;;  %s5953_s16 = scalar_lea.sflag [#allocation4], %s534_s2 }
 0x2cd   : > { %1151 = vrot.lane.b32.xlu0 %v1097_v31, %s4837_s18  ;;  %v1017_v37 = vcombine.high %v993_v29, %v1008_v33  ;;  %v1016_v38 = vcombine.low %v993_v29, %v1008_v33  ;;  %v1114_v41 = vcombine.high %v1090_v32, %v4832_v28  ;;  %v1115_v46 = vcombine.high %v1097_v31, %v4832_v28  ;;  %v1196_v33 = vld [vmem:[%s5275_s9] sm:$0xff] }
 0x2ce   : > { %v1015_v40 = vrot.slane %v1001_v36, %v5191_v13  ;;  %v1106_v48 = vrot.slane %v1098_v34, %v5194_v18  ;;  %v1113_v50 = vrot.slane %v1099_v35, %v5194_v18 }
 0x2cf   : > { %v1031_v42 = vrot.slane %v1017_v37, %v5194_v18  ;;  %v1024_v43 = vrot.slane %v1016_v38, %v5194_v18 }
 0x2d0   : > { %v1032_v44 = vcombine.low %v1000_v39, %v1015_v40  ;;  %v1033_v45 = vcombine.high %v1000_v39, %v1015_v40  ;;  %v1116_v53 = vcombine.high %v1106_v48, %v4832_v28  ;;  %v1117_v55 = vcombine.high %v1113_v50, %v4832_v28  ;;  %v1197_v39 = vld [vmem:[%s5275_s9 + $0x8] sm:$0xff] }
 0x2d1   : > { %1147 = vrot.lane.b32.xlu0 %v1114_v41, %s4838_s15  ;;  %1123 = vrot.lane.b32.xlu1 %v1031_v42, %s4837_s18  ;;  %v1048_v47 = vcombine.high %v1024_v43, %v4832_v28  ;;  %v1049_v49 = vcombine.high %v1031_v42, %v4832_v28  ;;  %v1198_v42 = vld [vmem:[%s5275_s9 + $0x10] sm:$0xff] }
 0x2d2   : > { %v1040_v51 = vrot.slane %v1032_v44, %v5194_v18  ;;  %v1047_v54 = vrot.slane %v1033_v45, %v5194_v18  ;;  %v1199_v45 = vld [vmem:[%s5275_s9 + $0x18] sm:$0xff] }
 0x2d4   : > { %v1050_v56 = vcombine.high %v1040_v51, %v4832_v28  ;;  %v1051_v58 = vcombine.high %v1047_v54, %v4832_v28 }
 0x2d5   : > { %1155 = vrot.lane.b32.xlu0 %v1115_v46, %s4839_s29  ;;  %1119 = vrot.lane.b32.xlu1 %v1048_v47, %s4838_s15 }
 0x2d9   : > { %1159 = vrot.lane.b32.xlu0 %v1106_v48, %s4840_s30  ;;  %1127 = vrot.lane.b32.xlu1 %v1049_v49, %s4839_s29 }
 0x2dd   : > { %1167 = vrot.lane.b32.xlu0 %v1113_v50, %s4841_s24  ;;  %1131 = vrot.lane.b32.xlu1 %v1040_v51, %s4840_s30 }
 0x2e1   : > { %1163 = vrot.lane.b32.xlu0 %v1116_v53, %s4842_s21  ;;  %1139 = vrot.lane.b32.xlu1 %v1047_v54, %s4841_s24 }
 0x2e5   : > { %1171 = vrot.lane.b32.xlu0 %v1117_v55, %s4843_s12  ;;  %1135 = vrot.lane.b32.xlu1 %v1050_v56, %s4842_s21 }
 0x2e9   : > { %834 = vperm.xlu0 %4630, %v830_v57   ;;  %1143 = vrot.lane.b32.xlu1 %v1051_v58, %s4843_s12 }
 0x2ed   : > { %839 = vperm.xlu1 %4631, %v831_v60  }
 0x33f   : > { %v1152_v61 = vpop.permute.xlu0 %1151 }
 0x343   : > { %v1148_v62 = vpop.permute.xlu0 %1147  ;;  %v1124_v63 = vpop.permute.xlu1 %1123 }
 0x344   : > { %v1187_v4 = vsel %vm674_vm1, %v1090_v32, %v1148_v62 }
 0x345   : > { %v1188_v7 = vsel %vm1175_vm2, %v1187_v4, %v1152_v61 }
 0x347   : > { %v1156_v0 = vpop.permute.xlu0 %1155  ;;  %v1120_v1 = vpop.permute.xlu1 %1119 }
 0x348   : > { %v1189_v8 = vsel %vm1177_vm3, %v1188_v7, %v1156_v0  ;;  %v1174_v9 = vsel %vm674_vm1, %v1024_v43, %v1120_v1 }
 0x349   : > { %v1176_v15 = vsel %vm1175_vm2, %v1174_v9, %v1124_v63 }
 0x34b   : > { %v1160_v2 = vpop.permute.xlu0 %1159  ;;  %v1128_v3 = vpop.permute.xlu1 %1127 }
 0x34c   : > { %v1190_v10 = vsel %vm1179_vm4, %v1189_v8, %v1160_v2  ;;  %v1178_v16 = vsel %vm1177_vm3, %v1176_v15, %v1128_v3 }
 0x34f   : > { %v1168_v5 = vpop.permute.xlu0 %1167  ;;  %v1132_v6 = vpop.permute.xlu1 %1131 }
 0x350   : > { %v1180_v17 = vsel %vm1179_vm4, %v1178_v16, %v1132_v6 }
 0x353   : > { %v1164_v11 = vpop.permute.xlu0 %1163  ;;  %v1140_v12 = vpop.permute.xlu1 %1139 }
 0x354   : > { %v1191_v14 = vsel %vm1181_vm5, %v1190_v10, %v1164_v11 }
 0x355   : > { %v1192_v19 = vsel %vm1183_vm6, %v1191_v14, %v1168_v5 }
 0x357   : > { %v1172_v20 = vpop.permute.xlu0 %1171  ;;  %v1136_v21 = vpop.permute.xlu1 %1135 }
 0x358   : > { %v1193_v22 = vsel %vm1185_vm7, %v1192_v19, %v1172_v20  ;;  %v1182_v23 = vsel %vm1181_vm5, %v1180_v17, %v1136_v21 }
 0x359   : > { %4095 = vmatprep.subr.msk.mxu1 %vm1207_vm8, %v1193_v22  ;;  %v1184_v24 = vsel %vm1183_vm6, %v1182_v23, %v1140_v12 }
 0x35b   : > { %v1144_v25 = vpop.permute.xlu1 %1143 }
 0x35c   : > { %v1186_v29 = vsel %vm1185_vm7, %v1184_v24, %v1144_v25 }
 0x35d   : > { %4096 = vmatpush1.msk.msra.mxu1 %vm1207_vm8, %v1186_v29 }
 0x35e   : > { %4097 = vmatmul.mubr.msk.f32.vlgmr.msra.gmra.mrb[6].mxu1 %vm1200_vm9, %v1194_v26  ;;  %4443 = vmatprep.subr.bf16.mxu1 %v4830_v27 }
 0x35f   : > { %1284 = vmatprep.mubr.f32.mxu1 %v4832_v28 }
 0x362   : > { %4098 = vmatmul.mubr.msk.f32.gmra.mrb[8].mxu1 %vm1200_vm9, %v1195_v30 }
 0x363   : > { %4293 = vmatprep.mubr.msk.f32.mxu1 %vm4831_vm0, %v4832_v28 }
 0x368   : > { %v835_v31 = vpop.permute.xlu0 %834 }
 0x369   : > { %v5265_v32 = vadd.f32 %v914_v59, %v835_v31 }
 0x36b   : > { %1299 = vrot.lane.b32.xlu1 %v5265_v32, %s4841_s24  ;;  %1293 = vrot.lane.b32.xlu0 %v5265_v32, %s4843_s12 }
 0x36c   : > { %v840_v41 = vpop.permute.xlu1 %839 }
 0x36d   : > { %v5321_v43 = vadd.f32 %v5227_v52, %v840_v41 }
 0x3dd   : > { %v5372_v47 = vpop.permute.xlu1 %1299  ;;  %v5374_v48 = vpop.permute.xlu0 %1293 }
 0x3de   : > { %v1335_v11 = vcombine.low %v5265_v32, %v5372_v47 }
 0x431   : > { %v1280_v34 = vpop.f32.mrb[6].mxu1 }
 0x432   : > { %v5278_v35 = vadd.f32 %v1280_v34, %v1196_v33  ;;  %v1282_v36 = vpop.f32.mrb[7].mxu1 }
 0x433   : > { %v5293_v40 = vadd.f32 %v1282_v36, %v1197_v39 }
 0x434   : > { %1615 = vrot.lane.b32.xlu1 %v5278_v35, %s4841_s24  ;;  %1609 = vrot.lane.b32.xlu0 %v5278_v35, %s4843_s12 }
 0x435   : > { %v1286_v37 = vpop.f32.mrb[8].mxu1 }
 0x436   : > { %v1288_v38 = vpop.f32.mrb[9].mxu1  ;;  %v5327_v44 = vadd.f32 %v1286_v37, %v1198_v42 }
 0x437   : > { %v5342_v46 = vadd.f32 %v1288_v38, %v1199_v45 }
 0x438   : > { %1627 = vrot.lane.b32.xlu1 %v5278_v35, %s4840_s30  ;;  %1621 = vrot.lane.b32.xlu0 %v5278_v35, %s4842_s21 }
 0x43c   : > { %1639 = vrot.lane.b32.xlu1 %v5278_v35, %s4837_s18  ;;  %1633 = vrot.lane.b32.xlu0 %v5278_v35, %s4839_s29 }
 0x440   : > { %1653 = vrot.lane.b32.xlu1 %v5293_v40, %s4843_s12  ;;  %1645 = vrot.lane.b32.xlu0 %v5278_v35, %s4838_s15 }
 0x444   : > { %1665 = vrot.lane.b32.xlu1 %v5293_v40, %s4842_s21  ;;  %1659 = vrot.lane.b32.xlu0 %v5293_v40, %s4841_s24 }
 0x448   : > { %1677 = vrot.lane.b32.xlu1 %v5293_v40, %s4839_s29  ;;  %1671 = vrot.lane.b32.xlu0 %v5293_v40, %s4840_s30 }
 0x44c   : > { %1689 = vrot.lane.b32.xlu1 %v5293_v40, %s4838_s15  ;;  %1683 = vrot.lane.b32.xlu0 %v5293_v40, %s4837_s18 }
 0x450   : > { %1311 = vrot.lane.b32.xlu1 %v5265_v32, %s4840_s30  ;;  %1305 = vrot.lane.b32.xlu0 %v5265_v32, %s4842_s21 }
 0x454   : > { %1323 = vrot.lane.b32.xlu1 %v5265_v32, %s4837_s18  ;;  %1317 = vrot.lane.b32.xlu0 %v5265_v32, %s4839_s29 }
 0x458   : > { %1295 = vrot.lane.b32.xlu1 %v5321_v43, %s4843_s12  ;;  %1329 = vrot.lane.b32.xlu0 %v5265_v32, %s4838_s15 }
 0x45c   : > { %1611 = vrot.lane.b32.xlu1 %v5327_v44, %s4843_s12  ;;  %1617 = vrot.lane.b32.xlu0 %v5327_v44, %s4841_s24 }
 0x460   : > { %1623 = vrot.lane.b32.xlu1 %v5327_v44, %s4842_s21  ;;  %1629 = vrot.lane.b32.xlu0 %v5327_v44, %s4840_s30 }
 0x464   : > { %1635 = vrot.lane.b32.xlu1 %v5327_v44, %s4839_s29  ;;  %1641 = vrot.lane.b32.xlu0 %v5327_v44, %s4837_s18 }
 0x468   : > { %1647 = vrot.lane.b32.xlu1 %v5327_v44, %s4838_s15  ;;  %1655 = vrot.lane.b32.xlu0 %v5342_v46, %s4843_s12 }
 0x46c   : > { %1661 = vrot.lane.b32.xlu1 %v5342_v46, %s4841_s24  ;;  %1667 = vrot.lane.b32.xlu0 %v5342_v46, %s4842_s21 }
 0x470   : > { %1673 = vrot.lane.b32.xlu1 %v5342_v46, %s4840_s30  ;;  %1679 = vrot.lane.b32.xlu0 %v5342_v46, %s4839_s29 }
 0x474   : > { %1685 = vrot.lane.b32.xlu1 %v5342_v46, %s4837_s18  ;;  %1691 = vrot.lane.b32.xlu0 %v5342_v46, %s4838_s15 }
 0x478   : > { %1307 = vrot.lane.b32.xlu1 %v5321_v43, %s4842_s21  ;;  %1301 = vrot.lane.b32.xlu0 %v5321_v43, %s4841_s24 }
 0x47c   : > { %1319 = vrot.lane.b32.xlu1 %v5321_v43, %s4839_s29  ;;  %1313 = vrot.lane.b32.xlu0 %v5321_v43, %s4840_s30 }
 0x480   : > { %1331 = vrot.lane.b32.xlu1 %v5321_v43, %s4838_s15  ;;  %1325 = vrot.lane.b32.xlu0 %v5321_v43, %s4837_s18 }
 0x4a6   : > { %v5376_v49 = vpop.permute.xlu1 %1615  ;;  %v1610_v50 = vpop.permute.xlu0 %1609 }
 0x4a7   : > { %v1695_v61 = vcombine.low %v5278_v35, %v5376_v49  ;;  %v1696_v12 = vcombine.high %v5278_v35, %v5376_v49 }
 0x4a9   : > { %v1703_v5 = vrot.slane %v1695_v61, %v5191_v13 }
 0x4aa   : > { %v5378_v51 = vpop.permute.xlu1 %1627  ;;  %v1622_v52 = vpop.permute.xlu0 %1621 }
 0x4ab   : > { %v1711_v59 = vcombine.low %v1610_v50, %v1622_v52  ;;  %v1712_v14 = vcombine.high %v1610_v50, %v1622_v52 }
 0x4ad   : > { %v1719_v3 = vrot.slane %v1711_v59, %v5191_v13 }
 0x4ae   : > { %v5380_v53 = vpop.permute.xlu1 %1639  ;;  %v1634_v54 = vpop.permute.xlu0 %1633 }
 0x4af   : > { %v1727_v0 = vcombine.low %v5378_v51, %v5380_v53  ;;  %v1759_v15 = vcombine.low %v1703_v5, %v1719_v3  ;;  %v1760_v21 = vcombine.high %v1703_v5, %v1719_v3  ;;  %v1728_v25 = vcombine.high %v5378_v51, %v5380_v53 }
 0x4b1   : > { %v1735_v8 = vrot.slane %v1727_v0, %v5191_v13  ;;  %v5406_v34 = vrot.slane %v1759_v15, %v5194_v18  ;;  %v5416_v45 = vrot.slane %v1760_v21, %v5194_v18 }
 0x4b2   : > { %v1654_v55 = vpop.permute.xlu1 %1653  ;;  %v1646_v56 = vpop.permute.xlu0 %1645 }
 0x4b3   : > { %v1743_v60 = vcombine.low %v1634_v54, %v1646_v56  ;;  %v1744_v35 = vcombine.high %v1634_v54, %v1646_v56 }
 0x4b5   : > { %v1751_v4 = vrot.slane %v1743_v60, %v5191_v13 }
 0x4b6   : > { %v1666_v57 = vpop.permute.xlu1 %1665  ;;  %v1660_v58 = vpop.permute.xlu0 %1659 }
 0x4b7   : > { %v1847_v62 = vcombine.low %v1654_v55, %v1666_v57  ;;  %v1831_v63 = vcombine.low %v5293_v40, %v1660_v58  ;;  %v1791_v16 = vcombine.low %v1735_v8, %v1751_v4  ;;  %v1792_v17 = vcombine.high %v1735_v8, %v1751_v4 }
 0x4b8   : > { %v1848_v36 = vcombine.high %v1654_v55, %v1666_v57  ;;  %v1832_v37 = vcombine.high %v5293_v40, %v1660_v58  ;;  %v5439_v57 = vrot.slane %v1712_v14, %v5191_v13  ;;  %v5442_v58 = vrot.slane %v1744_v35, %v5191_v13 }
 0x4b9   : > { %v1855_v6 = vrot.slane %v1847_v62, %v5191_v13  ;;  %v1839_v7 = vrot.slane %v1831_v63, %v5191_v13  ;;  %v5410_v38 = vrot.slane %v1791_v16, %v5194_v18  ;;  %v5413_v39 = vrot.slane %v1792_v17, %v5194_v18 }
 0x4ba   : > { %v1678_v1 = vpop.permute.xlu1 %1677  ;;  %v1672_v2 = vpop.permute.xlu0 %1671  ;;  %v5445_v59 = vrot.slane %v1848_v36, %v5191_v13  ;;  %v5448_v60 = vrot.slane %v1832_v37, %v5191_v13 }
 0x4bb   : > { %v1895_v22 = vcombine.low %v1839_v7, %v1855_v6  ;;  %v1896_v23 = vcombine.high %v1839_v7, %v1855_v6  ;;  %v1823_v61 = vcombine.low %v5406_v34, %v5410_v38  ;;  %v1825_v62 = vcombine.low %v5416_v45, %v5413_v39 }
 0x4bc   : > { %v1911_v15 = vcombine.low %v5448_v60, %v5445_v59 }
 0x4bd   : > { %v5419_v49 = vrot.slane %v1895_v22, %v5194_v18  ;;  %v5422_v50 = vrot.slane %v1896_v23, %v5194_v18 }
 0x4be   : > { %v1690_v9 = vpop.permute.xlu1 %1689  ;;  %v1684_v10 = vpop.permute.xlu0 %1683  ;;  %v5510_v35 = vrot.slane %v1911_v15, %v5194_v18 }
 0x4bf   : > { %v1879_v19 = vcombine.low %v1678_v1, %v1690_v9  ;;  %v1863_v20 = vcombine.low %v1672_v2, %v1684_v10  ;;  %v1880_v24 = vcombine.high %v1678_v1, %v1690_v9  ;;  %v1864_v29 = vcombine.high %v1672_v2, %v1684_v10 }
 0x4c0   : > { %v5459_v1 = vrot.slane %v1696_v12, %v5191_v13  ;;  %v5462_v2 = vrot.slane %v1728_v25, %v5191_v13  ;;  %v1343_v10 = vrot.slane %v1335_v11, %v5191_v13 }
 0x4c1   : > { %v1887_v26 = vrot.slane %v1879_v19, %v5191_v13  ;;  %v1871_v30 = vrot.slane %v1863_v20, %v5191_v13  ;;  %v5425_v51 = vrot.slane %v1880_v24, %v5191_v13  ;;  %v5428_v40 = vrot.slane %v1864_v29, %v5191_v13 }
 0x4c2   : > { %v5401_v31 = vpop.permute.xlu1 %1311  ;;  %v5403_v33 = vpop.permute.xlu0 %1305  ;;  %v1775_v12 = vcombine.low %v5459_v1, %v5439_v57  ;;  %v1807_v14 = vcombine.low %v5462_v2, %v5442_v58 }
 0x4c3   : > { %v1927_v41 = vcombine.low %v1871_v30, %v1887_v26  ;;  %v1928_v42 = vcombine.high %v1871_v30, %v1887_v26  ;;  %v1351_v54 = vcombine.low %v5374_v48, %v5403_v33  ;;  %v1943_v4 = vcombine.low %v5428_v40, %v5425_v51 }
 0x4c4   : > { %v1352_v20 = vcombine.high %v5374_v48, %v5403_v33  ;;  %v1336_v30 = vcombine.high %v5265_v32, %v5372_v47  ;;  %v5504_v48 = vrot.slane %v1775_v12, %v5194_v18  ;;  %v5507_v33 = vrot.slane %v1807_v14, %v5194_v18 }
 0x4c5   : > { %v5431_v52 = vrot.slane %v1927_v41, %v5194_v18  ;;  %v5434_v53 = vrot.slane %v1928_v42, %v5194_v18  ;;  %v1359_v7 = vrot.slane %v1351_v54, %v5191_v13  ;;  %v5488_v11 = vrot.slane %v1943_v4, %v5194_v18 }
 0x4c6   : > { %v1324_v55 = vpop.permute.xlu1 %1323  ;;  %v1318_v56 = vpop.permute.xlu0 %1317  ;;  %v1944_v36 = vcombine.high %v5428_v40, %v5425_v51  ;;  %v5522_v42 = vrot.slane %v1352_v20, %v5191_v13  ;;  %v1912_v4 = vcombine.high %v5448_v60, %v5445_v59 }
 0x4c7   : > { %v1959_v63 = vcombine.low %v5419_v49, %v5431_v52  ;;  %v1961_v0 = vcombine.low %v5422_v50, %v5434_v53  ;;  %v1367_v16 = vcombine.low %v5401_v31, %v1324_v55  ;;  %v1399_v21 = vcombine.low %v1343_v10, %v1359_v7 }
 0x4c8   : > { %v1400_v24 = vcombine.high %v1343_v10, %v1359_v7  ;;  %v1368_v25 = vcombine.high %v5401_v31, %v1324_v55  ;;  %v1960_v32 = vcombine.high %v5419_v49, %v5431_v52  ;;  %v1963_v47 = vcombine.low %v5510_v35, %v5488_v11 }
 0x4c9   : > { %v4444_v5 = vpack.c.bf16 %v1959_v63, %v1823_v61  ;;  %v4452_v6 = vpack.c.bf16 %v1961_v0, %v1825_v62  ;;  %v1375_v26 = vrot.slane %v1367_v16, %v5191_v13  ;;  %v1407_v54 = vrot.slane %v1399_v21, %v5194_v18 }
 0x4ca   : > { %v5473_v8 = vpop.permute.xlu1 %1295  ;;  %v1330_v9 = vpop.permute.xlu0 %1329  ;;  %v5530_v51 = vrot.slane %v1400_v24, %v5194_v18  ;;  %v1382_v40 = vrot.slane %v1368_v25, %v5191_v13  ;;  %v1350_v52 = vrot.slane %v1336_v30, %v5191_v13  ;;  %v1808_v62 = vcombine.high %v5462_v2, %v5442_v58 }
 0x4cb   : > { %4446 = vmatpush3.bf16.xpose.msk.msra.mxu1 %vm5466_vm10, %v4444_v5  ;;  %v1383_v17 = vcombine.low %v1318_v56, %v1330_v9  ;;  %v1384_v19 = vcombine.high %v1318_v56, %v1330_v9  ;;  %4454 = vmatpush3.bf16.xpose.msk.msra.mxu0 %vm5466_vm10, %v4452_v6  ;;  %v1824_v63 = vcombine.high %v5406_v34, %v5410_v38 }
 0x4cc   : > { %4447 = vmatprep.subr.bf16.mxu1 %v4830_v27  ;;  %4459 = vmatprep.subr.bf16.mxu0 %v4830_v27  ;;  %v1827_v0 = vcombine.low %v5504_v48, %v5507_v33  ;;  %v1776_v34 = vcombine.high %v5459_v1, %v5439_v57  ;;  %v5556_v38 = vrot.slane %v1944_v36, %v5194_v18 }
 0x4cd   : > { %v1391_v29 = vrot.slane %v1383_v17, %v5191_v13  ;;  %v5515_v31 = vrot.slane %v1384_v19, %v5191_v13  ;;  %v4448_v9 = vpack.c.bf16 %v1960_v32, %v1824_v63  ;;  %v1415_v59 = vcombine.low %v1350_v52, %v5522_v42 }
 0x4ce   : > { %v5492_v22 = vpop.permute.xlu1 %1611  ;;  %v5494_v23 = vpop.permute.xlu0 %1617  ;;  %v4460_v10 = vpack.c.bf16 %v1963_v47, %v1827_v0  ;;  %v5566_v60 = vrot.slane %v1808_v62, %v5194_v18  ;;  %v5569_v57 = vrot.slane %v1912_v4, %v5194_v18  ;;  %v1962_v2 = vcombine.high %v5422_v50, %v5434_v53 }
 0x4cf   : > { %v1431_v37 = vcombine.low %v1375_v26, %v1391_v29  ;;  %v1432_v41 = vcombine.high %v1375_v26, %v1391_v29  ;;  %v1447_v5 = vcombine.low %v1382_v40, %v5515_v31  ;;  %v5586_v16 = vrot.slane %v1776_v34, %v5194_v18 }
 0x4d0   : > { %v1965_v17 = vcombine.low %v5569_v57, %v5556_v38  ;;  %v5591_v19 = vrot.slane %v1415_v59, %v5194_v18  ;;  %v1826_v50 = vcombine.high %v5416_v45, %v5413_v39  ;;  %v1448_v25 = vcombine.high %v1382_v40, %v5515_v31 }
 0x4d1   : > { %v1439_v61 = vrot.slane %v1431_v37, %v5194_v18  ;;  %v5535_v49 = vrot.slane %v1432_v41, %v5194_v18  ;;  %v5572_v1 = vrot.slane %v1447_v5, %v5194_v18  ;;  %v1829_v53 = vcombine.low %v5586_v16, %v5566_v60 }
 0x4d2   : > { %v5525_v55 = vpop.permute.xlu1 %1623  ;;  %v5527_v56 = vpop.permute.xlu0 %1629  ;;  %v4456_v24 = vpack.c.bf16 %v1962_v2, %v1826_v50  ;;  %v1416_v39 = vcombine.high %v1350_v52, %v5522_v42  ;;  %v1964_v32 = vcombine.high %v5510_v35, %v5488_v11  ;;  %v5625_v47 = vrot.slane %v1448_v25, %v5194_v18 }
 0x4d3   : > { %v1463_v6 = vcombine.low %v1407_v54, %v1439_v61  ;;  %v1465_v7 = vcombine.low %v5530_v51, %v5535_v49  ;;  %v1464_v20 = vcombine.high %v1407_v54, %v1439_v61  ;;  %v1467_v21 = vcombine.low %v5591_v19, %v5572_v1 }
 0x4d4   : > { %v4468_v30 = vpack.c.bf16 %v1965_v17, %v1829_v53  ;;  %v1983_v45 = vcombine.low %v5492_v22, %v5525_v55  ;;  %v1967_v40 = vcombine.low %v5327_v44, %v5494_v23  ;;  %v1828_v11 = vcombine.high %v5504_v48, %v5507_v33 }
 0x4d5   : > { %4294 = vmatmul.mubr.msk.f32.vlgmr.msra.gmra.mrb[10].mxu1 %vm674_vm1, %v1463_v6  ;;  %4308 = vmatmul.mubr.msk.f32.vlgmr.msra.gmra.mrb[2].mxu0 %vm674_vm1, %v1465_v7  ;;  %v5644_v35 = vrot.slane %v1416_v39, %v5194_v18  ;;  %v1466_v52 = vcombine.high %v5530_v51, %v5535_v49  ;;  %v1966_v17 = vcombine.high %v5569_v57, %v5556_v38 }
 0x4d6   : > { %v5549_v12 = vpop.permute.xlu1 %1635  ;;  %v5551_v58 = vpop.permute.xlu0 %1641  ;;  %4450 = vmatpush3.bf16.xpose.msk.msra.mxu1 %vm5466_vm10, %v4448_v9  ;;  %4462 = vmatpush3.bf16.xpose.msk.msra.mxu0 %vm5466_vm10, %v4460_v10  ;;  %v5650_v62 = vrot.slane %v1983_v45, %v5191_v13  ;;  %v4464_v48 = vpack.c.bf16 %v1964_v32, %v1828_v11  ;;  %v5668_v49 = vrot.slane %v1967_v40, %v5191_v13 }
 0x4d7   : > { %4300 = vmatprep.mubr.msk.f32.mxu1 %vm4831_vm0, %v4832_v28  ;;  %4321 = vmatprep.mubr.msk.f32.mxu0 %vm4831_vm0, %v4832_v28  ;;  %v1999_v31 = vcombine.low %v5527_v56, %v5551_v58  ;;  %v1469_v33 = vcombine.low %v5644_v35, %v5625_v47  ;;  %v1468_v25 = vcombine.high %v5591_v19, %v5572_v1 }
 0x4d8   : > { %4455 = vmatprep.subr.bf16.mxu1 %v4830_v27  ;;  %4467 = vmatprep.subr.bf16.mxu0 %v4830_v27  ;;  %v2031_v10 = vcombine.low %v5668_v49, %v5650_v62  ;;  %v1470_v1 = vcombine.high %v5644_v35, %v5625_v47  ;;  %v1968_v19 = vcombine.high %v5327_v44, %v5494_v23 }
 0x4d9   : > { %v5653_v63 = vrot.slane %v1999_v31, %v5191_v13  ;;  %v2000_v44 = vcombine.high %v5527_v56, %v5551_v58  ;;  %v2032_v35 = vcombine.high %v5668_v49, %v5650_v62 }
 0x4da   : > { %v5578_v14 = vpop.permute.xlu1 %1647  ;;  %v5580_v15 = vpop.permute.xlu0 %1655  ;;  %v2039_v38 = vrot.slane %v2031_v10, %v5194_v18 }
 0x4db   : > { %v2015_v36 = vcombine.low %v5549_v12, %v5578_v14  ;;  %v2016_v32 = vcombine.high %v5549_v12, %v5578_v14  ;;  %v2014_v10 = vrot.slane %v2000_v44, %v5191_v13 }
 0x4dd   : > { %4301 = vmatmul.mubr.msk.f32.vlgmr.msra.gmra.mrb[12].mxu1 %vm674_vm1, %v1464_v20  ;;  %4322 = vmatmul.mubr.msk.f32.vlgmr.msra.gmra.mrb[4].mxu0 %vm674_vm1, %v1467_v21  ;;  %v5636_v61 = vrot.slane %v2015_v36, %v5191_v13 }
 0x4de   : > { %v5601_v26 = vpop.permute.xlu1 %1661  ;;  %v5603_v29 = vpop.permute.xlu0 %1667  ;;  %4458 = vmatpush3.bf16.xpose.msk.msra.mxu1 %vm5466_vm10, %v4456_v24  ;;  %4470 = vmatpush3.bf16.xpose.msk.msra.mxu0 %vm5466_vm10, %v4468_v30  ;;  %v1830_v24 = vcombine.high %v5586_v16, %v5566_v60 }
 0x4df   : > { %v2103_v37 = vcombine.low %v5342_v46, %v5601_v26  ;;  %v2119_v41 = vcombine.low %v5580_v15, %v5603_v29  ;;  %4314 = vmatprep.mubr.msk.f32.mxu1 %vm4831_vm0, %v4832_v28  ;;  %4335 = vmatprep.mubr.msk.f32.mxu0 %vm4831_vm0, %v4832_v28  ;;  %v2063_v6 = vcombine.low %v5653_v63, %v5636_v61 }
 0x4e0   : > { %4463 = vmatprep.subr.bf16.mxu1 %v4830_v27  ;;  %4475 = vmatprep.subr.bf16.mxu0 %v4830_v27  ;;  %v4472_v36 = vpack.c.bf16 %v1966_v17, %v1830_v24  ;;  %v2120_v56 = vcombine.high %v5580_v15, %v5603_v29 }
 0x4e1   : > { %v5656_v0 = vrot.slane %v2103_v37, %v5191_v13  ;;  %v5659_v4 = vrot.slane %v2119_v41, %v5191_v13  ;;  %v2071_v20 = vrot.slane %v2063_v6, %v5194_v18  ;;  %v1984_v41 = vcombine.high %v5492_v22, %v5525_v55 }
 0x4e2   : > { %v5627_v42 = vpop.permute.xlu1 %1673  ;;  %v5629_v54 = vpop.permute.xlu0 %1679  ;;  %v5773_v49 = vrot.slane %v2120_v56, %v5191_v13 }
 0x4e3   : > { %v2167_v34 = vcombine.low %v5656_v0, %v5659_v4  ;;  %v2095_v60 = vcombine.low %v2039_v38, %v2071_v20  ;;  %v2168_v58 = vcombine.high %v5656_v0, %v5659_v4 }
 0x4e5   : > { %4315 = vmatmul.mubr.msk.f32.vlgmr.msra.gmra.mrb[14].mxu1 %vm674_vm1, %v1466_v52  ;;  %4336 = vmatmul.mubr.msk.f32.vlgmr.msra.gmra.mrb[6].mxu0 %vm674_vm1, %v1469_v33  ;;  %v2175_v57 = vrot.slane %v2167_v34, %v5194_v18  ;;  %v2182_v6 = vrot.slane %v2168_v58, %v5194_v18 }
 0x4e6   : > { %v5663_v5 = vpop.permute.xlu1 %1685  ;;  %v5665_v51 = vpop.permute.xlu0 %1691  ;;  %4466 = vmatpush3.bf16.xpose.msk.msra.mxu1 %vm5466_vm10, %v4464_v48  ;;  %4328 = vmatprep.mubr.msk.f32.mxu1 %vm4831_vm0, %v4832_v28  ;;  %v2096_v48 = vcombine.high %v2039_v38, %v2071_v20 }
 0x4e7   : > { %v2135_v7 = vcombine.low %v5627_v42, %v5663_v5  ;;  %v2151_v9 = vcombine.low %v5629_v54, %v5665_v51  ;;  %4471 = vmatprep.subr.bf16.mxu1 %v4830_v27  ;;  %4349 = vmatprep.mubr.msk.f32.mxu0 %vm4831_vm0, %v4832_v28  ;;  %v2136_v40 = vcombine.high %v5627_v42, %v5663_v5 }
 0x4e8   : > { %v2152_v11 = vcombine.high %v5629_v54, %v5665_v51  ;;  %v2064_v42 = vcombine.high %v5653_v63, %v5636_v61  ;;  %v2104_v54 = vcombine.high %v5342_v46, %v5601_v26  ;;  %v5755_v46 = vrot.slane %v2016_v32, %v5191_v13 }
 0x4e9   : > { %v2143_v59 = vrot.slane %v2135_v7, %v5191_v13  ;;  %v2159_v2 = vrot.slane %v2151_v9, %v5191_v13  ;;  %v5758_v15 = vrot.slane %v2136_v40, %v5191_v13  ;;  %v5778_v7 = vrot.slane %v1968_v19, %v5191_v13 }
 0x4ea   : > { %v5690_v50 = vpop.permute.xlu1 %1307  ;;  %v5692_v53 = vpop.permute.xlu0 %1301  ;;  %v5761_v26 = vrot.slane %v2152_v11, %v5191_v13  ;;  %v2078_v5 = vrot.slane %v2064_v42, %v5194_v18  ;;  %v5770_v51 = vrot.slane %v2104_v54, %v5191_v13  ;;  %v5781_v9 = vrot.slane %v1984_v41, %v5191_v13 }
 0x4eb   : > { %v2199_v21 = vcombine.low %v2143_v59, %v2159_v2  ;;  %v1487_v39 = vcombine.low %v5473_v8, %v5690_v50  ;;  %v1471_v45 = vcombine.low %v5321_v43, %v5692_v53  ;;  %v2200_v52 = vcombine.high %v2143_v59, %v2159_v2 }
 0x4ec   : > { %v2046_v59 = vrot.slane %v2032_v35, %v5194_v18  ;;  %v2215_v2 = vcombine.low %v5758_v15, %v5761_v26  ;;  %v2079_v20 = vcombine.low %v2014_v10, %v5755_v46  ;;  %v1488_v40 = vcombine.high %v5473_v8, %v5690_v50 }
 0x4ed   : > { %v2207_v30 = vrot.slane %v2199_v21, %v5194_v18  ;;  %4329 = vmatmul.mubr.msk.f32.vlgmr.msra.gmra.mrb[16].mxu1 %vm674_vm1, %v1468_v25  ;;  %v5733_v23 = vrot.slane %v1487_v39, %v5191_v13  ;;  %v5736_v55 = vrot.slane %v1471_v45, %v5191_v13  ;;  %v2214_v29 = vrot.slane %v2200_v52, %v5194_v18 }
 0x4ee   : > { %v5709_v31 = vpop.permute.xlu1 %1319  ;;  %v5711_v37 = vpop.permute.xlu0 %1313  ;;  %4474 = vmatpush3.bf16.xpose.msk.msra.mxu1 %vm5466_vm10, %v4472_v36  ;;  %4342 = vmatprep.mubr.msk.f32.mxu1 %vm4831_vm0, %v4832_v28  ;;  %v2097_v38 = vcombine.low %v2046_v59, %v2078_v5  ;;  %v2223_v19 = vrot.slane %v2215_v2, %v5194_v18  ;;  %v1472_v11 = vcombine.high %v5321_v43, %v5692_v53 }
 0x4ef   : > { %v2231_v16 = vcombine.low %v2175_v57, %v2207_v30  ;;  %v2232_v22 = vcombine.high %v2175_v57, %v2207_v30  ;;  %4479 = vmatprep.subr.bf16.mxu1 %v4830_v27  ;;  %v1535_v62 = vcombine.low %v5736_v55, %v5733_v23  ;;  %v2233_v17 = vcombine.low %v2182_v6, %v2214_v29 }
 0x4f0   : > { %v2234_v21 = vcombine.high %v2182_v6, %v2214_v29  ;;  %v2098_v57 = vcombine.high %v2046_v59, %v2078_v5  ;;  %v2183_v30 = vcombine.low %v5770_v51, %v5773_v49  ;;  %v2216_v53 = vcombine.high %v5758_v15, %v5761_v26 }
 0x4f1   : > { %v4476_v47 = vpack.c.bf16 %v2231_v16, %v2095_v60  ;;  %v4480_v63 = vpack.c.bf16 %v2232_v22, %v2096_v48  ;;  %v1543_v24 = vrot.slane %v1535_v62, %v5194_v18  ;;  %v4484_v41 = vpack.c.bf16 %v2233_v17, %v2097_v38 }
 0x4f2   : > { %v1332_v12 = vpop.permute.xlu1 %1331  ;;  %v1326_v14 = vpop.permute.xlu0 %1325  ;;  %v4488_v32 = vpack.c.bf16 %v2234_v21, %v2098_v57  ;;  %v2191_v52 = vrot.slane %v2183_v30, %v5194_v18  ;;  %v2184_v54 = vcombine.high %v5770_v51, %v5773_v49  ;;  %v2048_v48 = vcombine.high %v5778_v7, %v5781_v9 }
 0x4f3   : > { %4478 = vmatpush3.bf16.xpose.msk.msra.mxu0 %vm5466_vm10, %v4476_v47  ;;  %v1519_v33 = vcombine.low %v5709_v31, %v1332_v12  ;;  %v1503_v61 = vcombine.low %v5711_v37, %v1326_v14  ;;  %v1520_v36 = vcombine.high %v5709_v31, %v1332_v12  ;;  %v1504_v39 = vcombine.high %v5711_v37, %v1326_v14 }
 0x4f4   : > { %4483 = vmatprep.subr.bf16.mxu0 %v4830_v27  ;;  %v1536_v31 = vcombine.high %v5736_v55, %v5733_v23  ;;  %v2087_v37 = vrot.slane %v2079_v20, %v5194_v18  ;;  %v2235_v44 = vcombine.low %v2191_v52, %v2223_v19  ;;  %v2236_v22 = vcombine.high %v2191_v52, %v2223_v19 }
 0x4f5   : > { %v1527_v0 = vrot.slane %v1519_v33, %v5191_v13  ;;  %v1511_v4 = vrot.slane %v1503_v61, %v5191_v13  ;;  %4343 = vmatmul.mubr.msk.f32.vlgmr.msra.gmra.mrb[18].mxu1 %vm674_vm1, %v1470_v1  ;;  %v2047_v1 = vcombine.low %v5778_v7, %v5781_v9  ;;  %v1534_v47 = vrot.slane %v1520_v36, %v5191_v13 }
 0x4f6   : > { %4482 = vmatpush3.bf16.xpose.msk.msra.mxu1 %vm5466_vm10, %v4480_v63  ;;  %4356 = vmatprep.mubr.msk.f32.mxu1 %vm4831_vm0, %v4832_v28  ;;  %v1518_v8 = vrot.slane %v1504_v39, %v5191_v13  ;;  %v1502_v23 = vrot.slane %v1488_v40, %v5191_v13  ;;  %v1486_v55 = vrot.slane %v1472_v11, %v5191_v13 }
 0x4f7   : > { %v1567_v34 = vcombine.low %v1511_v4, %v1527_v0  ;;  %4487 = vmatprep.subr.bf16.mxu1 %v4830_v27  ;;  %v1568_v45 = vcombine.high %v1511_v4, %v1527_v0  ;;  %v2055_v50 = vrot.slane %v2047_v1, %v5194_v18  ;;  %v1550_v12 = vrot.slane %v1536_v31, %v5194_v18 }
 0x4f8   : > { %v2080_v14 = vcombine.high %v2014_v10, %v5755_v46  ;;  %v1583_v58 = vcombine.low %v1518_v8, %v1534_v47  ;;  %v2230_v33 = vrot.slane %v2216_v53, %v5194_v18  ;;  %v1551_v29 = vcombine.low %v1486_v55, %v1502_v23 }
 0x4f9   : > { %v1575_v25 = vrot.slane %v1567_v34, %v5194_v18  ;;  %v1582_v43 = vrot.slane %v1568_v45, %v5194_v18  ;;  %v2099_v42 = vcombine.low %v2055_v50, %v2087_v37  ;;  %v2100_v56 = vcombine.high %v2055_v50, %v2087_v37 }
 0x4fa   : > { %v2094_v46 = vrot.slane %v2080_v14, %v5194_v18  ;;  %v2198_v63 = vrot.slane %v2184_v54, %v5194_v18  ;;  %v1591_v62 = vrot.slane %v1583_v58, %v5194_v18  ;;  %v2062_v0 = vrot.slane %v2048_v48, %v5194_v18 }
 0x4fb   : > { %v1599_v60 = vcombine.low %v1543_v24, %v1575_v25  ;;  %v1600_v16 = vcombine.high %v1543_v24, %v1575_v25  ;;  %v1601_v35 = vcombine.low %v1550_v12, %v1582_v43  ;;  %v4492_v61 = vpack.c.bf16 %v2235_v44, %v2099_v42 }
 0x4fc   : > { %v1602_v15 = vcombine.high %v1550_v12, %v1582_v43  ;;  %v4496_v26 = vpack.c.bf16 %v2236_v22, %v2100_v56  ;;  %v2237_v4 = vcombine.low %v2198_v63, %v2230_v33  ;;  %v2238_v5 = vcombine.high %v2198_v63, %v2230_v33 }
 0x4fd   : > { %4350 = vmatmul.mubr.msk.f32.vlgmr.msra.gmra.mrb[8].mxu0 %vm674_vm1, %v1599_v60  ;;  %4357 = vmatmul.mubr.msk.f32.vlgmr.msra.gmra.mrb[20].mxu1 %vm674_vm1, %v1600_v16  ;;  %v1559_v51 = vrot.slane %v1551_v29, %v5194_v18  ;;  %v2101_v49 = vcombine.low %v2062_v0, %v2094_v46  ;;  %v2102_v6 = vcombine.high %v2062_v0, %v2094_v46 }
 0x4fe   : > { %4486 = vmatpush3.bf16.xpose.msk.msra.mxu0 %vm5466_vm10, %v4484_v41  ;;  %4490 = vmatpush3.bf16.xpose.msk.msra.mxu1 %vm5466_vm10, %v4488_v32  ;;  %v1584_v7 = vcombine.high %v1518_v8, %v1534_v47  ;;  %v1552_v2 = vcombine.high %v1486_v55, %v1502_v23 }
 0x4ff   : > { %4363 = vmatprep.mubr.msk.f32.mxu0 %vm4831_vm0, %v4832_v28  ;;  %4370 = vmatprep.mubr.msk.f32.mxu1 %vm4831_vm0, %v4832_v28  ;;  %v1603_v9 = vcombine.low %v1559_v51, %v1591_v62  ;;  %v4500_v10 = vpack.c.bf16 %v2237_v4, %v2101_v49  ;;  %v1604_v34 = vcombine.high %v1559_v51, %v1591_v62 }
 0x500   : > { %4491 = vmatprep.subr.bf16.mxu0 %v4830_v27  ;;  %4495 = vmatprep.subr.bf16.mxu1 %v4830_v27  ;;  %v4504_v59 = vpack.c.bf16 %v2238_v5, %v2102_v6  ;;  %v1598_v17 = vrot.slane %v1584_v7, %v5194_v18 }
 0x505   : > { %4364 = vmatmul.mubr.msk.f32.vlgmr.msra.gmra.mrb[10].mxu0 %vm674_vm1, %v1601_v35  ;;  %4371 = vmatmul.mubr.msk.f32.vlgmr.msra.gmra.mrb[22].mxu1 %vm674_vm1, %v1602_v15 }
 0x506   : > { %4494 = vmatpush3.bf16.xpose.msk.msra.mxu0 %vm5466_vm10, %v4492_v61  ;;  %4498 = vmatpush3.bf16.xpose.msk.msra.mxu1 %vm5466_vm10, %v4496_v26 }
 0x507   : > { %4377 = vmatprep.mubr.msk.f32.mxu0 %vm4831_vm0, %v4832_v28  ;;  %4384 = vmatprep.mubr.msk.f32.mxu1 %vm4831_vm0, %v4832_v28 }
 0x508   : > { %4499 = vmatprep.subr.bf16.mxu0 %v4830_v27  ;;  %4503 = vmatprep.subr.bf16.mxu1 %v4830_v27  ;;  %v1566_v27 = vrot.slane %v1552_v2, %v5194_v18 }
 0x50a   : > { %v1605_v20 = vcombine.low %v1566_v27, %v1598_v17  ;;  %v1606_v21 = vcombine.high %v1566_v27, %v1598_v17 }
 0x50d   : > { %4378 = vmatmul.mubr.msk.f32.vlgmr.msra.gmra.mrb[12].mxu0 %vm674_vm1, %v1603_v9  ;;  %4385 = vmatmul.mubr.msk.f32.vlgmr.msra.gmra.mrb[24].mxu1 %vm674_vm1, %v1604_v34 }
 0x50e   : > { %4502 = vmatpush3.bf16.xpose.msk.msra.mxu0 %vm5466_vm10, %v4500_v10  ;;  %4506 = vmatpush3.bf16.xpose.msk.msra.mxu1 %vm5466_vm10, %v4504_v59 }
 0x50f   : > { %4391 = vmatprep.mubr.msk.f32.mxu0 %vm4831_vm0, %v4832_v28  ;;  %4398 = vmatprep.mubr.msk.f32.mxu1 %vm4831_vm0, %v4832_v28 }
 0x515   : > { %4392 = vmatmul.mubr.msk.f32.vlgmr.msra.gmra.mrb[14].mxu0 %vm674_vm1, %v1605_v20  ;;  %4399 = vmatmul.mubr.msk.f32.vlgmr.msra.gmra.mrb[26].mxu1 %vm674_vm1, %v1606_v21 }
 0x5a8   : > { %v2314_v24 = vpop.f32.mrb[10].mxu1  ;;  %v2472_v25 = vpop.f32.mrb[2].mxu0 }
 0x5a9   : > { %v3503_v38 = vcombine.low %v2314_v24, %v2472_v25  ;;  %v3504_v57 = vcombine.high %v2314_v24, %v2472_v25  ;;  %v4295_v3 = vpop.f32.mrb[11].mxu1  ;;  %v4309_v30 = vpop.f32.mrb[3].mxu0 }
 0x5ab   : > { %v3511_v31 = vrot.slane %v3503_v38, %v5191_v13  ;;  %v3518_v37 = vrot.slane %v3504_v57, %v5191_v13 }
 0x5b0   : > { %v2393_v36 = vpop.f32.mrb[12].mxu1  ;;  %v2630_v39 = vpop.f32.mrb[4].mxu0 }
 0x5b1   : > { %v4302_v45 = vpop.f32.mrb[13].mxu1  ;;  %v4323_v60 = vpop.f32.mrb[5].mxu0 }
 0x5b8   : > { %v2551_v16 = vpop.f32.mrb[14].mxu1  ;;  %v2788_v19 = vpop.f32.mrb[6].mxu0 }
 0x5b9   : > { %v3519_v28 = vcombine.low %v2393_v36, %v2551_v16  ;;  %v3520_v1 = vcombine.high %v2393_v36, %v2551_v16  ;;  %v4316_v41 = vpop.f32.mrb[15].mxu1  ;;  %v3535_v32 = vcombine.low %v2630_v39, %v2788_v19  ;;  %v3536_v40 = vcombine.high %v2630_v39, %v2788_v19  ;;  %v4337_v11 = vpop.f32.mrb[7].mxu0 }
 0x5bb   : > { %v3527_v52 = vrot.slane %v3519_v28, %v5191_v13  ;;  %v3534_v47 = vrot.slane %v3520_v1, %v5191_v13  ;;  %v3543_v42 = vrot.slane %v3535_v32, %v5191_v13  ;;  %v3550_v54 = vrot.slane %v3536_v40, %v5191_v13 }
 0x5bd   : > { %v3567_v8 = vcombine.low %v3511_v31, %v3527_v52  ;;  %v3568_v43 = vcombine.high %v3511_v31, %v3527_v52  ;;  %v3583_v50 = vcombine.low %v3518_v37, %v3534_v47  ;;  %v3584_v53 = vcombine.high %v3518_v37, %v3534_v47 }
 0x5bf   : > { %v5877_v15 = vrot.slane %v3567_v8, %v5194_v18  ;;  %v3582_v26 = vrot.slane %v3568_v43, %v5194_v18  ;;  %v3591_v29 = vrot.slane %v3583_v50, %v5194_v18  ;;  %v3598_v49 = vrot.slane %v3584_v53, %v5194_v18 }
 0x5c0   : > { %v2709_v44 = vpop.f32.mrb[16].mxu1 }
 0x5c1   : > { %v4330_v22 = vpop.f32.mrb[17].mxu1 }
 0x5c8   : > { %v2867_v23 = vpop.f32.mrb[18].mxu1 }
 0x5c9   : > { %v3551_v55 = vcombine.low %v2709_v44, %v2867_v23  ;;  %v3552_v12 = vcombine.high %v2709_v44, %v2867_v23  ;;  %v4344_v14 = vpop.f32.mrb[19].mxu1 }
 0x5cb   : > { %v3559_v56 = vrot.slane %v3551_v55, %v5191_v13  ;;  %v3566_v58 = vrot.slane %v3552_v12, %v5191_v13 }
 0x5cd   : > { %v3599_v35 = vcombine.low %v3543_v42, %v3559_v56  ;;  %v3600_v48 = vcombine.high %v3543_v42, %v3559_v56  ;;  %v3615_v33 = vcombine.low %v3550_v54, %v3566_v58  ;;  %v3616_v61 = vcombine.high %v3550_v54, %v3566_v58 }
 0x5cf   : > { %v5882_v63 = vrot.slane %v3599_v35, %v5194_v18  ;;  %v3614_v62 = vrot.slane %v3600_v48, %v5194_v18  ;;  %v3623_v0 = vrot.slane %v3615_v33, %v5194_v18  ;;  %v3630_v4 = vrot.slane %v3616_v61, %v5194_v18 }
 0x5d0   : > { %v2946_v46 = vpop.f32.mrb[8].mxu0  ;;  %v3025_v5 = vpop.f32.mrb[20].mxu1 }
 0x5d1   : > { %v4351_v51 = vpop.f32.mrb[9].mxu0  ;;  %v4358_v6 = vpop.f32.mrb[21].mxu1  ;;  %v3632_v7 = vcombine.high %v5877_v15, %v5882_v63  ;;  %v3633_v9 = vcombine.low %v3582_v26, %v3614_v62  ;;  %v3634_v10 = vcombine.high %v3582_v26, %v3614_v62  ;;  %v3635_v34 = vcombine.low %v3591_v29, %v3623_v0 }
 0x5d2   : > { %v3636_v59 = vcombine.high %v3591_v29, %v3623_v0  ;;  %v3637_v2 = vcombine.low %v3598_v49, %v3630_v4  ;;  %v3638_v17 = vcombine.high %v3598_v49, %v3630_v4  ;;  %v3631_v27 = vcombine.low %v5877_v15, %v5882_v63 }
 0x5d3   : > { %3777 = vrot.lane.b32.xlu0 %v3632_v7, %s4838_s15 }
 0x5d7   : > { %3785 = vrot.lane.b32.xlu0 %v3633_v9, %s4837_s18 }
 0x5d8   : > { %v3104_v20 = vpop.f32.mrb[10].mxu0  ;;  %v3183_v25 = vpop.f32.mrb[22].mxu1 }
 0x5d9   : > { %v3639_v21 = vcombine.low %v2946_v46, %v3104_v20  ;;  %v3640_v24 = vcombine.high %v2946_v46, %v3104_v20  ;;  %v4365_v38 = vpop.f32.mrb[11].mxu0  ;;  %v3655_v57 = vcombine.low %v3025_v5, %v3183_v25  ;;  %v3656_v3 = vcombine.high %v3025_v5, %v3183_v25  ;;  %v4372_v30 = vpop.f32.mrb[23].mxu1 }
 0x5db   : > { %v3647_v36 = vrot.slane %v3639_v21, %v5191_v13  ;;  %v3654_v39 = vrot.slane %v3640_v24, %v5191_v13  ;;  %v3663_v45 = vrot.slane %v3655_v57, %v5191_v13  ;;  %v3670_v60 = vrot.slane %v3656_v3, %v5191_v13  ;;  %3793 = vrot.lane.b32.xlu0 %v3634_v10, %s4839_s29 }
 0x5dd   : > { %v3703_v16 = vcombine.low %v3647_v36, %v3663_v45  ;;  %v3704_v28 = vcombine.high %v3647_v36, %v3663_v45  ;;  %v3719_v1 = vcombine.low %v3654_v39, %v3670_v60  ;;  %v3720_v19 = vcombine.high %v3654_v39, %v3670_v60 }
 0x5df   : > { %3801 = vrot.lane.b32.xlu0 %v3635_v34, %s4840_s30  ;;  %v3711_v56 = vrot.slane %v3703_v16, %v5194_v18  ;;  %v3718_v58 = vrot.slane %v3704_v28, %v5194_v18  ;;  %v3727_v35 = vrot.slane %v3719_v1, %v5194_v18  ;;  %v3734_v26 = vrot.slane %v3720_v19, %v5194_v18 }
 0x5e0   : > { %v3262_v41 = vpop.f32.mrb[12].mxu0  ;;  %v3341_v32 = vpop.f32.mrb[24].mxu1 }
 0x5e1   : > { %v4379_v40 = vpop.f32.mrb[13].mxu0  ;;  %v4386_v11 = vpop.f32.mrb[25].mxu1 }
 0x5e3   : > { %3809 = vrot.lane.b32.xlu0 %v3636_v59, %s4842_s21 }
 0x5e7   : > { %3817 = vrot.lane.b32.xlu0 %v3637_v2, %s4841_s24 }
 0x5e8   : > { %v3420_v31 = vpop.f32.mrb[14].mxu0  ;;  %v3499_v47 = vpop.f32.mrb[26].mxu1 }
 0x5e9   : > { %v3671_v37 = vcombine.low %v3262_v41, %v3420_v31  ;;  %v3672_v52 = vcombine.high %v3262_v41, %v3420_v31  ;;  %v4393_v8 = vpop.f32.mrb[15].mxu0  ;;  %v3687_v43 = vcombine.low %v3341_v32, %v3499_v47  ;;  %v3688_v50 = vcombine.high %v3341_v32, %v3499_v47  ;;  %v4400_v53 = vpop.f32.mrb[27].mxu1 }
 0x5eb   : > { %v3679_v44 = vrot.slane %v3671_v37, %v5191_v13  ;;  %v3686_v22 = vrot.slane %v3672_v52, %v5191_v13  ;;  %v3695_v23 = vrot.slane %v3687_v43, %v5191_v13  ;;  %v3702_v55 = vrot.slane %v3688_v50, %v5191_v13  ;;  %3825 = vrot.lane.b32.xlu0 %v3638_v17, %s4843_s12 }
 0x5ed   : > { %v3735_v12 = vcombine.low %v3679_v44, %v3695_v23  ;;  %v3736_v14 = vcombine.high %v3679_v44, %v3695_v23  ;;  %v3751_v42 = vcombine.low %v3686_v22, %v3702_v55  ;;  %v3752_v54 = vcombine.high %v3686_v22, %v3702_v55 }
 0x5ef   : > { %v3743_v48 = vrot.slane %v3735_v12, %v5194_v18  ;;  %v3750_v33 = vrot.slane %v3736_v14, %v5194_v18  ;;  %v3759_v61 = vrot.slane %v3751_v42, %v5194_v18  ;;  %v3766_v13 = vrot.slane %v3752_v54, %v5194_v18 }
 0x5f1   : > { %v3768_v29 = vcombine.high %v3711_v56, %v3743_v48  ;;  %v3769_v46 = vcombine.low %v3718_v58, %v3750_v33  ;;  %v3770_v62 = vcombine.high %v3718_v58, %v3750_v33  ;;  %v3771_v0 = vcombine.low %v3727_v35, %v3759_v61 }
 0x5f2   : > { %v3772_v4 = vcombine.high %v3727_v35, %v3759_v61  ;;  %v3773_v5 = vcombine.low %v3734_v26, %v3766_v13  ;;  %v3774_v51 = vcombine.high %v3734_v26, %v3766_v13  ;;  %v3767_v49 = vcombine.low %v3711_v56, %v3743_v48 }
 0x5f3   : > { %3779 = vrot.lane.b32.xlu1 %v3768_v29, %s4838_s15 }
 0x5f7   : > { %3787 = vrot.lane.b32.xlu1 %v3769_v46, %s4837_s18  ;;  %s4077_s18 = sshll.u32 %s534_s2, 4 }
 0x5f8   : > { %s536_s15 = scalar_lea.vmem [#allocation7], %s4077_s18 }
 0x5fb   : > { %3795 = vrot.lane.b32.xlu1 %v3770_v62, %s4839_s29  ;;  %s4148_s29 = sshll.u32 %s4810_s19, 1 }
 0x5ff   : > { %3803 = vrot.lane.b32.xlu1 %v3771_v0, %s4840_s30  ;;  %s4149_s30 = sshll.u32 %s4814_s20, 2 }
 0x603   : > { %3811 = vrot.lane.b32.xlu1 %v3772_v4, %s4842_s21  ;;  %s3863_s21 = sshll.u32 %s536_s15, 4  ;;  %s5941_s21 = int_to_ptr.vmem [resolvable:$true] %s3863_s21 }
 0x604   : > { %s4700_s10 = scalar_lea.vmem %s5941_s21, 256  ;;  %p4707_p5 = scmp.lt.s32.totalorder %s5941_s21, %s4705_s25 }
 0x605   : > { %p4701_p11 = scmp.ne.s32.totalorder %s5941_s21, %s4700_s10  ;;  %p4708_p6 = scmp.lt.s32.totalorder %s4706_s22, %s4700_s10 }
 0x607   : > { %3819 = vrot.lane.b32.xlu1 %v3773_v5, %s4841_s24  ;;  %s3860_s24 = sadd.s32 %s4149_s30, %s4148_s29  ;;  %p4702_p13 = pnand %p4701_p11, %p6066_p3 }
 0x608   : > { %p4709_p12 = por %p4708_p6, %p4707_p5 }
 0x609   : > { %p4703_p0 = pneg %p4702_p13 }
 0x60b   : > { %3827 = vrot.lane.b32.xlu1 %v3774_v51, %s4843_s12  ;;  %s4150_s12 = sshll.u32 %s3860_s24, 7  ;;  %p4710_p2 = pnand %p4709_p12, %p4703_p0 }
 0x60c   : > { %s5948_s11 = scalar_lea.hbm %s6065_s4, %s4150_s12 }
 0x645   : > { %v3778_v18 = vpop.permute.xlu0 %3777 }
 0x646   : > { %v3831_v34 = vsel %vm674_vm1, %v3631_v27, %v3778_v18 }
 0x649   : > { %v3786_v6 = vpop.permute.xlu0 %3785 }
 0x64a   : > { %v3833_v59 = vsel %vm1175_vm2, %v3831_v34, %v3786_v6 }
 0x64d   : > { %v3794_v7 = vpop.permute.xlu0 %3793 }
 0x64e   : > { %v3835_v17 = vsel %vm1177_vm3, %v3833_v59, %v3794_v7 }
 0x651   : > { %v3802_v9 = vpop.permute.xlu0 %3801 }
 0x652   : > { %v3837_v20 = vsel %vm1179_vm4, %v3835_v17, %v3802_v9 }
 0x655   : > { %v3810_v10 = vpop.permute.xlu0 %3809 }
 0x656   : > { %v3839_v21 = vsel %vm1181_vm5, %v3837_v20, %v3810_v10 }
 0x659   : > { %v3818_v2 = vpop.permute.xlu0 %3817 }
 0x65a   : > { %v3841_v24 = vsel %vm1183_vm6, %v3839_v21, %v3818_v2 }
 0x65d   : > { %v3826_v25 = vpop.permute.xlu0 %3825 }
 0x65e   : > { %v3843_v15 = vsel %vm1185_vm7, %v3841_v24, %v3826_v25 }
 0x65f   : > { %3845 = vst [vmem:[%s536_s15] sm:$0xff] %v3843_v15 }
 0x665   : > { %v3780_v63 = vpop.permute.xlu1 %3779 }
 0x666   : > { %v3832_v30 = vsel %vm674_vm1, %v3767_v49, %v3780_v63 }
 0x669   : > { %v3788_v27 = vpop.permute.xlu1 %3787 }
 0x66a   : > { %v3834_v36 = vsel %vm1175_vm2, %v3832_v30, %v3788_v27 }
 0x66d   : > { %v3796_v38 = vpop.permute.xlu1 %3795 }
 0x66e   : > { %v3836_v45 = vsel %vm1177_vm3, %v3834_v36, %v3796_v38 }
 0x671   : > { %v3804_v57 = vpop.permute.xlu1 %3803 }
 0x672   : > { %v3838_v60 = vsel %vm1179_vm4, %v3836_v45, %v3804_v57 }
 0x675   : > { %v3812_v3 = vpop.permute.xlu1 %3811 }
 0x676   : > { %v3840_v16 = vsel %vm1181_vm5, %v3838_v60, %v3812_v3 }
 0x679   : > { %v3820_v39 = vpop.permute.xlu1 %3819 }
 0x67a   : > { %v3842_v28 = vsel %vm1183_vm6, %v3840_v16, %v3820_v39 }
 0x67d   : > { %v3828_v1 = vpop.permute.xlu1 %3827 }
 0x67e   : > { %v3844_v19 = vsel %vm1185_vm7, %v3842_v28, %v3828_v1 }
 0x67f   : > { %3846 = vst [vmem:[%s536_s15 + $0x8] sm:$0xff] %v3844_v19 }
 0x680   : > { %4713 = shalt.err (!%p4710_p2)
}
 0x681   : > { %s4714_s9 = scalar_lea.hbm %s5948_s11, 256  ;;  %s4718_s15 = scalar_lea.hbm %s6065_s4, 2048 }
 0x682   : > { %p4715_p8 = scmp.ne.s32.totalorder %s5948_s11, %s4714_s9  ;;  %p4719_p9 = scmp.lt.u32.totalorder %s5948_s11, %s6065_s4 }
 0x683   : > { %p4720_p7 = scmp.lt.u32.totalorder %s4718_s15, %s4714_s9  ;;  %p4722_p11 = scmp.lt.u32.totalorder %s4714_s9, %s5948_s11 }
 0x684   : > { %p4716_p10 = pnand %p4715_p8, %p6066_p3 }
 0x685   : > { %p4721_p4 = por %p4720_p7, %p4719_p9 }
 0x686   : > { %p4717_p1 = pneg %p4716_p10 }
 0x687   : > { %p4723_p13 = por %p4722_p11, %p4721_p4 }
 0x689   : > { %p4724_p0 = pnand %p4723_p13, %p4717_p1 }
 0x68b   : > { %4727 = shalt.err (!%p4724_p0)
}
 0x68c   : > { %s4845_s24 = smov 128   ;;  %s4846_s12 = smov 8  }
 0x68d   : > { %4511 = dma.vmem_to_hbm [thread:$0]  (%p6066_p3), %s5941_s21, 256, %s5948_s11, %s5953_s16, %s4845_s24, %s4845_s24, %s4846_s12  }
 0x68e PF: > { %p4525_p5 = scmp.ge.s32.totalorder %s4826_s23, 2  ;;  %s3878_s19 = sand.u32 1, %s4786_s13  }
 0x68f   : > { %p6067_p6 = scmp.ne.s32.totalorder %s6051_s27, 0  ;;  %s3879_s20 = scalar_lea.sflag [#allocation4], %s3878_s19 }
 0x691   : > { %p4521_p12 = pnand %p4525_p5, %p6067_p6 }
 0x693   : > { %4781 = dma.done.wait (!%p4521_p12), %s3879_s20, 256  }
 0x694   : > { %4783 = vsyncadd (!%p4521_p12), %s3879_s20, 4294967040  ;;  %s29_s23 = sadd.s32 1, %s4826_s23   ;;  %s6068_s10 = sld [smem:[#allocation11_spill]] }
 0x695   : > { %p26_p2 = scmp.ge.s32.totalorder %s29_s23, 10   ;;  %s6069_s15 = sld [smem:[#allocation18_spill]] }
 0x696   : > { %s6070_s26 = sld [smem:[#allocation12_spill]]  ;;  %s6071_s18 = sld [smem:[#allocation17_spill]] }
 0x697   : > { %s6072_s19 = sld [smem:[#allocation13_spill]]  ;;  %s6073_s20 = sld [smem:[#allocation14_spill]] }
 0x698   : > { %s6074_s21 = sld [smem:[#allocation15_spill]]  ;;  %s6075_s22 = sld [smem:[#allocation16_spill]] }
 0x699   : > { %s6076_s13 = smov %s4790_s14  ;;  %s6078_s16 = smov %s4802_s17 }
 0x69a   : > { %s6077_s14 = smov %s6068_s10  ;;  %28 = sbr.rel (!%p26_p2) target bundleno = 16 (0x10), region = 139 }
 0x69c   : > { %s6079_s17 = smov %s6070_s26 }
 0x6a1   :  { %3884 = vsyncpa [#allocation3], 1 }
 0x6a2   :  { %3886 = vsyncpa [#allocation3 + $0x1], 1 }
 0x6a3   :  { %3887 = vsyncpa [#allocation6], 1 }
 0x6a4   :  { %3889 = vsyncpa [#allocation6 + $0x1], 1 }
 0x6a5   :  { %3890 = vsyncpa [#allocation4], 1 }
 0x6a6   :  { %3892 = vsyncpa [#allocation4 + $0x1], 1 }

</bundles_post_ra>
